<compile_context>
chip_gen: v6e
topology: v6e:2x2x1
jax: 0.10.0
libtpu: 0.0.40
codegen_flags: <defaults>
</compile_context>

<pallas_src>
import functools

import jax
import jax.numpy as jnp
import numpy as np
from jax import lax
from jax.experimental import pallas as pl
from jax.experimental.pallas import tpu as pltpu


# -----------------------------------------------------------------------------
# Pallas kernel: (fused) layer-major multi-layer LSTM + output_proj
# -----------------------------------------------------------------------------
def _lstm_model_kernel(x_ref, wf0_ref, bf0_ref, w_ih_ref, w_hh_ref, b_g_ref,
                       w_out_ref, b_out_ref, out_ref,
                       *, num_layers, hidden, seq_len, batch):
    H, L, T, B = hidden, num_layers, seq_len, batch

    # ---- layer-0 non-recurrent gate half for ALL timesteps, input_proj fused:
    # x_ref is time-major flattened (T*B, D); one clean MXU matmul.
    gih = (jnp.dot(x_ref[...], wf0_ref[...],
                   preferred_element_type=jnp.float32)
           + bf0_ref[...])                                      # (T*B, 4H)

    # lanes [2H, 3H) are the "g" (cell candidate) gate -> tanh; i/f/o -> sigmoid.
    # Single-tanh trick: sigmoid(x) = 0.5*tanh(0.5*x) + 0.5. Hoisted constants.
    lane = lax.broadcasted_iota(jnp.int32, (B, 4 * H), 1)
    g_mask = (lane >= 2 * H) & (lane < 3 * H)
    g_scale = jnp.where(g_mask, jnp.float32(1.0), jnp.float32(0.5))

    h_last = None
    for l in range(L):                                          # static unroll
        w_hh_l = w_hh_ref[l]                                    # (H, 4H) once
        h = jnp.zeros((B, H), jnp.float32)
        c = jnp.zeros((B, H), jnp.float32)
        h_seq = []
        for t in range(T):                                      # static unroll
            # only the recurrent matmul sits on the serial dependency chain;
            # gih slice is a contiguous, tile-aligned static slice.
            gates = gih[t * B:(t + 1) * B, :] + jnp.dot(
                h, w_hh_l, preferred_element_type=jnp.float32)  # (B, 4H)
            # ONE tanh pass over the whole gate vreg (VPU select/FMA is filler)
            y = jnp.tanh(gates * g_scale)
            act = jnp.where(g_mask, y, 0.5 * y + 0.5)
            i_g = act[:, 0 * H:1 * H]
            f_g = act[:, 1 * H:2 * H]
            g_g = act[:, 2 * H:3 * H]
            o_g = act[:, 3 * H:4 * H]
            c = f_g * c + i_g * g_g
            h = o_g * jnp.tanh(c)
            h_seq.append(h)
        h_last = h
        if l + 1 < L:
            # next layer's non-recurrent gate half, batched over all T in one
            # (T*B, H)@(H, 4H) matmul; sequence kept as traced vreg values.
            seq = jnp.concatenate(h_seq, axis=0)                # (T*B, H)
            gih = (jnp.dot(seq, w_ih_ref[l + 1],
                           preferred_element_type=jnp.float32)
                   + b_g_ref[l + 1])                            # (T*B, 4H)

    # output projection on the last timestep's top-layer hidden state.
    # w_out/b_out are lane-padded to 128 in the wrapper -> unmasked dense store.
    out_ref[...] = (jnp.dot(h_last, w_out_ref[...],
                            preferred_element_type=jnp.float32)
                    + b_out_ref[...]).astype(out_ref.dtype)


# -----------------------------------------------------------------------------
# Wrapper
# -----------------------------------------------------------------------------
def lstm_model_forward(x, params, *, num_layers, hidden, output_size):
    """x: (B, T, D) batch-first, float32. Returns (B, output_size)."""
    B, T, D = x.shape
    H, L, O = hidden, num_layers, output_size
    x = x.astype(jnp.float32)

    # pad batch to a multiple of 8 sublanes; padded rows are discarded below
    Bp = max(8, ((B + 7) // 8) * 8)
    if Bp != B:
        x = jnp.pad(x, ((0, Bp - B), (0, 0), (0, 0)))

    # time-major flatten OUTSIDE the kernel (cheap XLA ops on a tiny tensor);
    # makes every in-kernel per-timestep access a contiguous tile-aligned slice
    x_tm = jnp.transpose(x, (1, 0, 2)).reshape(T * Bp, D)       # (T*Bp, D)

    # fold input_proj into layer-0's input-hidden weights (exact linear fusion)
    w_f0 = params["w_in"] @ params["w_ih"][0]                   # (D, 4H)
    b_f0 = params["b_in"] @ params["w_ih"][0] + params["b_g"][0]  # (1, 4H)

    # pad the output projection to a 128-lane-dense width for an unmasked store
    Op = max(128, ((O + 127) // 128) * 128)
    w_out_p = jnp.zeros((H, Op), jnp.float32).at[:, :O].set(params["w_out"])
    b_out_p = jnp.zeros((1, Op), jnp.float32).at[:, :O].set(params["b_out"])

    kernel = functools.partial(_lstm_model_kernel, num_layers=L, hidden=H,
                               seq_len=T, batch=Bp)
    vmem = pl.BlockSpec(memory_space=pltpu.MemorySpace.VMEM)

    out = pl.pallas_call(
        kernel,
        out_shape=jax.ShapeDtypeStruct((Bp, Op), jnp.float32),
        in_specs=[vmem] * 8,
        out_specs=vmem,
    )(x_tm, w_f0, b_f0,
      params["w_ih"], params["w_hh"], params["b_g"],
      w_out_p, b_out_p)

    return out[:B, :O]


# -----------------------------------------------------------------------------
# Deterministic parameter construction (PyTorch-style shapes, transposed)
# -----------------------------------------------------------------------------
def make_params(key, input_size, hidden_size, num_blocks, output_size):
    D, H, L, O = input_size, hidden_size, num_blocks, output_size
    k_lin_in = 1.0 / np.sqrt(D)
    k_lstm = 1.0 / np.sqrt(H)
    k_lin_out = 1.0 / np.sqrt(H)
    keys = jax.random.split(key, 4 + 4 * L)

    u = lambda k, shp, s: jax.random.uniform(k, shp, jnp.float32, -s, s)

    # input_proj: weight (H, D), bias (H,)  -> stored transposed (D, H)
    w_in = u(keys[0], (D, H), k_lin_in)
    b_in = u(keys[1], (1, H), k_lin_in)

    # LSTM layers: weight_ih (4H, in), weight_hh (4H, H), biases (4H,)
    # (module requires in == H for every layer; see NOTE above)
    w_ih = jnp.stack([u(keys[4 + 4 * l + 0], (H, 4 * H), k_lstm) for l in range(L)])
    w_hh = jnp.stack([u(keys[4 + 4 * l + 1], (H, 4 * H), k_lstm) for l in range(L)])
    b_g = jnp.stack([(u(keys[4 + 4 * l + 2], (1, 4 * H), k_lstm)
                      + u(keys[4 + 4 * l + 3], (1, 4 * H), k_lstm))
                     for l in range(L)])

    # output_proj: weight (O, H), bias (O,)  -> stored transposed (H, O)
    w_out = u(keys[2], (H, O), k_lin_out)
    b_out = u(keys[3], (1, O), k_lin_out)

    return dict(w_in=w_in, b_in=b_in, w_ih=w_ih, w_hh=w_hh, b_g=b_g,
                w_out=w_out, b_out=b_out)


# -----------------------------------------------------------------------------
# Pure-JAX reference (same math as PyTorch eval-mode forward)
# -----------------------------------------------------------------------------
def reference_forward(x, params, *, num_layers, hidden):
    H, L = hidden, num_layers
    B, T, _ = x.shape
    xp = x @ params["w_in"] + params["b_in"][0]            # (B, T, H)

    seq = xp
    for l in range(L):
        h = jnp.zeros((B, H), jnp.float32)
        c = jnp.zeros((B, H), jnp.float32)
        outs = []
        for t in range(T):
            gates = (seq[:, t, :] @ params["w_ih"][l]
                     + h @ params["w_hh"][l] + params["b_g"][l])
            i_g = jax.nn.sigmoid(gates[:, 0 * H:1 * H])
            f_g = jax.nn.sigmoid(gates[:, 1 * H:2 * H])
            g_g = jnp.tanh(gates[:, 2 * H:3 * H])
            o_g = jax.nn.sigmoid(gates[:, 3 * H:4 * H])
            c = f_g * c + i_g * g_g
            h = o_g * jnp.tanh(c)
            outs.append(h)
        seq = jnp.stack(outs, axis=1)                      # (B, T, H)

    return seq[:, -1, :] @ params["w_out"] + params["b_out"][0]


# -----------------------------------------------------------------------------
if __name__ == "__main__":
    # small shapes consistent with the module (input_size must equal hidden_size)
    B, T = 2, 8
    input_size = hidden_size = 32
    num_blocks = 2
    output_size = 4

    key = jax.random.PRNGKey(0)
    kx, kp = jax.random.split(key)
    x = jax.random.normal(kx, (B, T, input_size), jnp.float32)
    params = make_params(kp, input_size, hidden_size, num_blocks, output_size)

    out = lstm_model_forward(x, params, num_layers=num_blocks,
                             hidden=hidden_size, output_size=output_size)
    out = jax.block_until_ready(out)

    ref = reference_forward(x, params, num_layers=num_blocks, hidden=hidden_size)
    np.testing.assert_allclose(np.asarray(out), np.asarray(ref),
                               rtol=1e-4, atol=1e-4)
    print("KERNEL_OK")
</pallas_src>

<mosaic_0001>
module attributes {stable_mosaic.version = 11 : i64} {
  func.func @_lstm_model_kernel(%arg0: memref<64x32xf32, #tpu.memory_space<vmem>>, %arg1: memref<32x128xf32, #tpu.memory_space<vmem>>, %arg2: memref<1x128xf32, #tpu.memory_space<vmem>>, %arg3: memref<2x32x128xf32, #tpu.memory_space<vmem>>, %arg4: memref<2x32x128xf32, #tpu.memory_space<vmem>>, %arg5: memref<2x1x128xf32, #tpu.memory_space<vmem>>, %arg6: memref<32x128xf32, #tpu.memory_space<vmem>>, %arg7: memref<1x128xf32, #tpu.memory_space<vmem>>, %arg8: memref<8x128xf32, #tpu.memory_space<vmem>>) attributes {dimension_semantics = [], scalar_prefetch = 0 : i64, scratch_operands = 0 : i64, tpu.core_type = #tpu.core_type<tc>} {
    %c0 = arith.constant 0 : index
    %c0_0 = arith.constant 0 : index
    %0 = vector.load %arg0[%c0, %c0_0] : memref<64x32xf32, #tpu.memory_space<vmem>>, vector<64x32xf32>
    %c0_1 = arith.constant 0 : index
    %c0_2 = arith.constant 0 : index
    %1 = vector.load %arg1[%c0_1, %c0_2] : memref<32x128xf32, #tpu.memory_space<vmem>>, vector<32x128xf32>
    %cst = arith.constant dense<0.000000e+00> : vector<64x128xf32>
    %2 = tpu.matmul %0, %1, %cst {dimension_numbers = #tpu.dot_dimension_numbers<[1], [0], [0], [1], [0, 0, 1, 1], [], []>} : vector<64x32xf32>, vector<32x128xf32>, vector<64x128xf32> -> vector<64x128xf32>
    %c0_3 = arith.constant 0 : index
    %c0_4 = arith.constant 0 : index
    %3 = vector.load %arg2[%c0_3, %c0_4] : memref<1x128xf32, #tpu.memory_space<vmem>>, vector<1x128xf32>
    %4 = vector.broadcast %3 : vector<1x128xf32> to vector<64x128xf32>
    %5 = arith.addf %2, %4 : vector<64x128xf32>
    %6 = tpu.iota {dimensions = array<i32: 1>} : vector<8x128xi32>
    %c64_i32 = arith.constant 64 : i32
    %7 = vector.broadcast %c64_i32 : i32 to vector<8x128xi32>
    %8 = arith.cmpi sge, %6, %7 : vector<8x128xi32>
    %c96_i32 = arith.constant 96 : i32
    %9 = vector.broadcast %c96_i32 : i32 to vector<8x128xi32>
    %10 = arith.cmpi slt, %6, %9 : vector<8x128xi32>
    %11 = arith.andi %8, %10 : vector<8x128xi1>
    %cst_5 = arith.constant 1.000000e+00 : f32
    %cst_6 = arith.constant 5.000000e-01 : f32
    %12 = vector.broadcast %cst_5 : f32 to vector<8x128xf32>
    %13 = vector.broadcast %cst_6 : f32 to vector<8x128xf32>
    %14 = arith.select %11, %12, %13 : vector<8x128xi1>, vector<8x128xf32>
    %c0_7 = arith.constant 0 : index
    %c0_8 = arith.constant 0 : index
    %c0_9 = arith.constant 0 : index
    %15 = vector.load %arg4[%c0_7, %c0_8, %c0_9] : memref<2x32x128xf32, #tpu.memory_space<vmem>>, vector<1x32x128xf32>
    %16 = vector.shape_cast %15 : vector<1x32x128xf32> to vector<32x128xf32>
    %cst_10 = arith.constant 0.000000e+00 : f32
    %17 = vector.broadcast %cst_10 : f32 to vector<8x32xf32>
    %cst_11 = arith.constant 0.000000e+00 : f32
    %18 = vector.broadcast %cst_11 : f32 to vector<8x32xf32>
    %19 = vector.extract_strided_slice %5 {offsets = [0, 0], sizes = [8, 128], strides = [1, 1]} : vector<64x128xf32> to vector<8x128xf32>
    %cst_12 = arith.constant dense<0.000000e+00> : vector<8x128xf32>
    %20 = tpu.matmul %17, %16, %cst_12 {dimension_numbers = #tpu.dot_dimension_numbers<[1], [0], [0], [1], [0, 0, 1, 1], [], []>} : vector<8x32xf32>, vector<32x128xf32>, vector<8x128xf32> -> vector<8x128xf32>
    %21 = arith.addf %19, %20 : vector<8x128xf32>
    %22 = arith.mulf %21, %14 : vector<8x128xf32>
    %23 = math.tanh %22 : vector<8x128xf32>
    %cst_13 = arith.constant 5.000000e-01 : f32
    %24 = vector.broadcast %cst_13 : f32 to vector<8x128xf32>
    %25 = arith.mulf %24, %23 : vector<8x128xf32>
    %cst_14 = arith.constant 5.000000e-01 : f32
    %26 = vector.broadcast %cst_14 : f32 to vector<8x128xf32>
    %27 = arith.addf %25, %26 : vector<8x128xf32>
    %28 = arith.select %11, %23, %27 : vector<8x128xi1>, vector<8x128xf32>
    %29 = vector.extract_strided_slice %28 {offsets = [0, 0], sizes = [8, 32], strides = [1, 1]} : vector<8x128xf32> to vector<8x32xf32>
    %30 = vector.extract_strided_slice %28 {offsets = [0, 32], sizes = [8, 32], strides = [1, 1]} : vector<8x128xf32> to vector<8x32xf32>
    %31 = vector.extract_strided_slice %28 {offsets = [0, 64], sizes = [8, 32], strides = [1, 1]} : vector<8x128xf32> to vector<8x32xf32>
    %32 = vector.extract_strided_slice %28 {offsets = [0, 96], sizes = [8, 32], strides = [1, 1]} : vector<8x128xf32> to vector<8x32xf32>
    %33 = arith.mulf %30, %18 : vector<8x32xf32>
    %34 = arith.mulf %29, %31 : vector<8x32xf32>
    %35 = arith.addf %33, %34 : vector<8x32xf32>
    %36 = math.tanh %35 : vector<8x32xf32>
    %37 = arith.mulf %32, %36 : vector<8x32xf32>
    %38 = vector.extract_strided_slice %5 {offsets = [8, 0], sizes = [8, 128], strides = [1, 1]} : vector<64x128xf32> to vector<8x128xf32>
    %cst_15 = arith.constant dense<0.000000e+00> : vector<8x128xf32>
    %39 = tpu.matmul %37, %16, %cst_15 {dimension_numbers = #tpu.dot_dimension_numbers<[1], [0], [0], [1], [0, 0, 1, 1], [], []>} : vector<8x32xf32>, vector<32x128xf32>, vector<8x128xf32> -> vector<8x128xf32>
    %40 = arith.addf %38, %39 : vector<8x128xf32>
    %41 = arith.mulf %40, %14 : vector<8x128xf32>
    %42 = math.tanh %41 : vector<8x128xf32>
    %cst_16 = arith.constant 5.000000e-01 : f32
    %43 = vector.broadcast %cst_16 : f32 to vector<8x128xf32>
    %44 = arith.mulf %43, %42 : vector<8x128xf32>
    %cst_17 = arith.constant 5.000000e-01 : f32
    %45 = vector.broadcast %cst_17 : f32 to vector<8x128xf32>
    %46 = arith.addf %44, %45 : vector<8x128xf32>
    %47 = arith.select %11, %42, %46 : vector<8x128xi1>, vector<8x128xf32>
    %48 = vector.extract_strided_slice %47 {offsets = [0, 0], sizes = [8, 32], strides = [1, 1]} : vector<8x128xf32> to vector<8x32xf32>
    %49 = vector.extract_strided_slice %47 {offsets = [0, 32], sizes = [8, 32], strides = [1, 1]} : vector<8x128xf32> to vector<8x32xf32>
    %50 = vector.extract_strided_slice %47 {offsets = [0, 64], sizes = [8, 32], strides = [1, 1]} : vector<8x128xf32> to vector<8x32xf32>
    %51 = vector.extract_strided_slice %47 {offsets = [0, 96], sizes = [8, 32], strides = [1, 1]} : vector<8x128xf32> to vector<8x32xf32>
    %52 = arith.mulf %49, %35 : vector<8x32xf32>
    %53 = arith.mulf %48, %50 : vector<8x32xf32>
    %54 = arith.addf %52, %53 : vector<8x32xf32>
    %55 = math.tanh %54 : vector<8x32xf32>
    %56 = arith.mulf %51, %55 : vector<8x32xf32>
    %57 = vector.extract_strided_slice %5 {offsets = [16, 0], sizes = [8, 128], strides = [1, 1]} : vector<64x128xf32> to vector<8x128xf32>
    %cst_18 = arith.constant dense<0.000000e+00> : vector<8x128xf32>
    %58 = tpu.matmul %56, %16, %cst_18 {dimension_numbers = #tpu.dot_dimension_numbers<[1], [0], [0], [1], [0, 0, 1, 1], [], []>} : vector<8x32xf32>, vector<32x128xf32>, vector<8x128xf32> -> vector<8x128xf32>
    %59 = arith.addf %57, %58 : vector<8x128xf32>
    %60 = arith.mulf %59, %14 : vector<8x128xf32>
    %61 = math.tanh %60 : vector<8x128xf32>
    %cst_19 = arith.constant 5.000000e-01 : f32
    %62 = vector.broadcast %cst_19 : f32 to vector<8x128xf32>
    %63 = arith.mulf %62, %61 : vector<8x128xf32>
    %cst_20 = arith.constant 5.000000e-01 : f32
    %64 = vector.broadcast %cst_20 : f32 to vector<8x128xf32>
    %65 = arith.addf %63, %64 : vector<8x128xf32>
    %66 = arith.select %11, %61, %65 : vector<8x128xi1>, vector<8x128xf32>
    %67 = vector.extract_strided_slice %66 {offsets = [0, 0], sizes = [8, 32], strides = [1, 1]} : vector<8x128xf32> to vector<8x32xf32>
    %68 = vector.extract_strided_slice %66 {offsets = [0, 32], sizes = [8, 32], strides = [1, 1]} : vector<8x128xf32> to vector<8x32xf32>
    %69 = vector.extract_strided_slice %66 {offsets = [0, 64], sizes = [8, 32], strides = [1, 1]} : vector<8x128xf32> to vector<8x32xf32>
    %70 = vector.extract_strided_slice %66 {offsets = [0, 96], sizes = [8, 32], strides = [1, 1]} : vector<8x128xf32> to vector<8x32xf32>
    %71 = arith.mulf %68, %54 : vector<8x32xf32>
    %72 = arith.mulf %67, %69 : vector<8x32xf32>
    %73 = arith.addf %71, %72 : vector<8x32xf32>
    %74 = math.tanh %73 : vector<8x32xf32>
    %75 = arith.mulf %70, %74 : vector<8x32xf32>
    %76 = vector.extract_strided_slice %5 {offsets = [24, 0], sizes = [8, 128], strides = [1, 1]} : vector<64x128xf32> to vector<8x128xf32>
    %cst_21 = arith.constant dense<0.000000e+00> : vector<8x128xf32>
    %77 = tpu.matmul %75, %16, %cst_21 {dimension_numbers = #tpu.dot_dimension_numbers<[1], [0], [0], [1], [0, 0, 1, 1], [], []>} : vector<8x32xf32>, vector<32x128xf32>, vector<8x128xf32> -> vector<8x128xf32>
    %78 = arith.addf %76, %77 : vector<8x128xf32>
    %79 = arith.mulf %78, %14 : vector<8x128xf32>
    %80 = math.tanh %79 : vector<8x128xf32>
    %cst_22 = arith.constant 5.000000e-01 : f32
    %81 = vector.broadcast %cst_22 : f32 to vector<8x128xf32>
    %82 = arith.mulf %81, %80 : vector<8x128xf32>
    %cst_23 = arith.constant 5.000000e-01 : f32
    %83 = vector.broadcast %cst_23 : f32 to vector<8x128xf32>
    %84 = arith.addf %82, %83 : vector<8x128xf32>
    %85 = arith.select %11, %80, %84 : vector<8x128xi1>, vector<8x128xf32>
    %86 = vector.extract_strided_slice %85 {offsets = [0, 0], sizes = [8, 32], strides = [1, 1]} : vector<8x128xf32> to vector<8x32xf32>
    %87 = vector.extract_strided_slice %85 {offsets = [0, 32], sizes = [8, 32], strides = [1, 1]} : vector<8x128xf32> to vector<8x32xf32>
    %88 = vector.extract_strided_slice %85 {offsets = [0, 64], sizes = [8, 32], strides = [1, 1]} : vector<8x128xf32> to vector<8x32xf32>
    %89 = vector.extract_strided_slice %85 {offsets = [0, 96], sizes = [8, 32], strides = [1, 1]} : vector<8x128xf32> to vector<8x32xf32>
    %90 = arith.mulf %87, %73 : vector<8x32xf32>
    %91 = arith.mulf %86, %88 : vector<8x32xf32>
    %92 = arith.addf %90, %91 : vector<8x32xf32>
    %93 = math.tanh %92 : vector<8x32xf32>
    %94 = arith.mulf %89, %93 : vector<8x32xf32>
    %95 = vector.extract_strided_slice %5 {offsets = [32, 0], sizes = [8, 128], strides = [1, 1]} : vector<64x128xf32> to vector<8x128xf32>
    %cst_24 = arith.constant dense<0.000000e+00> : vector<8x128xf32>
    %96 = tpu.matmul %94, %16, %cst_24 {dimension_numbers = #tpu.dot_dimension_numbers<[1], [0], [0], [1], [0, 0, 1, 1], [], []>} : vector<8x32xf32>, vector<32x128xf32>, vector<8x128xf32> -> vector<8x128xf32>
    %97 = arith.addf %95, %96 : vector<8x128xf32>
    %98 = arith.mulf %97, %14 : vector<8x128xf32>
    %99 = math.tanh %98 : vector<8x128xf32>
    %cst_25 = arith.constant 5.000000e-01 : f32
    %100 = vector.broadcast %cst_25 : f32 to vector<8x128xf32>
    %101 = arith.mulf %100, %99 : vector<8x128xf32>
    %cst_26 = arith.constant 5.000000e-01 : f32
    %102 = vector.broadcast %cst_26 : f32 to vector<8x128xf32>
    %103 = arith.addf %101, %102 : vector<8x128xf32>
    %104 = arith.select %11, %99, %103 : vector<8x128xi1>, vector<8x128xf32>
    %105 = vector.extract_strided_slice %104 {offsets = [0, 0], sizes = [8, 32], strides = [1, 1]} : vector<8x128xf32> to vector<8x32xf32>
    %106 = vector.extract_strided_slice %104 {offsets = [0, 32], sizes = [8, 32], strides = [1, 1]} : vector<8x128xf32> to vector<8x32xf32>
    %107 = vector.extract_strided_slice %104 {offsets = [0, 64], sizes = [8, 32], strides = [1, 1]} : vector<8x128xf32> to vector<8x32xf32>
    %108 = vector.extract_strided_slice %104 {offsets = [0, 96], sizes = [8, 32], strides = [1, 1]} : vector<8x128xf32> to vector<8x32xf32>
    %109 = arith.mulf %106, %92 : vector<8x32xf32>
    %110 = arith.mulf %105, %107 : vector<8x32xf32>
    %111 = arith.addf %109, %110 : vector<8x32xf32>
    %112 = math.tanh %111 : vector<8x32xf32>
    %113 = arith.mulf %108, %112 : vector<8x32xf32>
    %114 = vector.extract_strided_slice %5 {offsets = [40, 0], sizes = [8, 128], strides = [1, 1]} : vector<64x128xf32> to vector<8x128xf32>
    %cst_27 = arith.constant dense<0.000000e+00> : vector<8x128xf32>
    %115 = tpu.matmul %113, %16, %cst_27 {dimension_numbers = #tpu.dot_dimension_numbers<[1], [0], [0], [1], [0, 0, 1, 1], [], []>} : vector<8x32xf32>, vector<32x128xf32>, vector<8x128xf32> -> vector<8x128xf32>
    %116 = arith.addf %114, %115 : vector<8x128xf32>
    %117 = arith.mulf %116, %14 : vector<8x128xf32>
    %118 = math.tanh %117 : vector<8x128xf32>
    %cst_28 = arith.constant 5.000000e-01 : f32
    %119 = vector.broadcast %cst_28 : f32 to vector<8x128xf32>
    %120 = arith.mulf %119, %118 : vector<8x128xf32>
    %cst_29 = arith.constant 5.000000e-01 : f32
    %121 = vector.broadcast %cst_29 : f32 to vector<8x128xf32>
    %122 = arith.addf %120, %121 : vector<8x128xf32>
    %123 = arith.select %11, %118, %122 : vector<8x128xi1>, vector<8x128xf32>
    %124 = vector.extract_strided_slice %123 {offsets = [0, 0], sizes = [8, 32], strides = [1, 1]} : vector<8x128xf32> to vector<8x32xf32>
    %125 = vector.extract_strided_slice %123 {offsets = [0, 32], sizes = [8, 32], strides = [1, 1]} : vector<8x128xf32> to vector<8x32xf32>
    %126 = vector.extract_strided_slice %123 {offsets = [0, 64], sizes = [8, 32], strides = [1, 1]} : vector<8x128xf32> to vector<8x32xf32>
    %127 = vector.extract_strided_slice %123 {offsets = [0, 96], sizes = [8, 32], strides = [1, 1]} : vector<8x128xf32> to vector<8x32xf32>
    %128 = arith.mulf %125, %111 : vector<8x32xf32>
    %129 = arith.mulf %124, %126 : vector<8x32xf32>
    %130 = arith.addf %128, %129 : vector<8x32xf32>
    %131 = math.tanh %130 : vector<8x32xf32>
    %132 = arith.mulf %127, %131 : vector<8x32xf32>
    %133 = vector.extract_strided_slice %5 {offsets = [48, 0], sizes = [8, 128], strides = [1, 1]} : vector<64x128xf32> to vector<8x128xf32>
    %cst_30 = arith.constant dense<0.000000e+00> : vector<8x128xf32>
    %134 = tpu.matmul %132, %16, %cst_30 {dimension_numbers = #tpu.dot_dimension_numbers<[1], [0], [0], [1], [0, 0, 1, 1], [], []>} : vector<8x32xf32>, vector<32x128xf32>, vector<8x128xf32> -> vector<8x128xf32>
    %135 = arith.addf %133, %134 : vector<8x128xf32>
    %136 = arith.mulf %135, %14 : vector<8x128xf32>
    %137 = math.tanh %136 : vector<8x128xf32>
    %cst_31 = arith.constant 5.000000e-01 : f32
    %138 = vector.broadcast %cst_31 : f32 to vector<8x128xf32>
    %139 = arith.mulf %138, %137 : vector<8x128xf32>
    %cst_32 = arith.constant 5.000000e-01 : f32
    %140 = vector.broadcast %cst_32 : f32 to vector<8x128xf32>
    %141 = arith.addf %139, %140 : vector<8x128xf32>
    %142 = arith.select %11, %137, %141 : vector<8x128xi1>, vector<8x128xf32>
    %143 = vector.extract_strided_slice %142 {offsets = [0, 0], sizes = [8, 32], strides = [1, 1]} : vector<8x128xf32> to vector<8x32xf32>
    %144 = vector.extract_strided_slice %142 {offsets = [0, 32], sizes = [8, 32], strides = [1, 1]} : vector<8x128xf32> to vector<8x32xf32>
    %145 = vector.extract_strided_slice %142 {offsets = [0, 64], sizes = [8, 32], strides = [1, 1]} : vector<8x128xf32> to vector<8x32xf32>
    %146 = vector.extract_strided_slice %142 {offsets = [0, 96], sizes = [8, 32], strides = [1, 1]} : vector<8x128xf32> to vector<8x32xf32>
    %147 = arith.mulf %144, %130 : vector<8x32xf32>
    %148 = arith.mulf %143, %145 : vector<8x32xf32>
    %149 = arith.addf %147, %148 : vector<8x32xf32>
    %150 = math.tanh %149 : vector<8x32xf32>
    %151 = arith.mulf %146, %150 : vector<8x32xf32>
    %152 = vector.extract_strided_slice %5 {offsets = [56, 0], sizes = [8, 128], strides = [1, 1]} : vector<64x128xf32> to vector<8x128xf32>
    %cst_33 = arith.constant dense<0.000000e+00> : vector<8x128xf32>
    %153 = tpu.matmul %151, %16, %cst_33 {dimension_numbers = #tpu.dot_dimension_numbers<[1], [0], [0], [1], [0, 0, 1, 1], [], []>} : vector<8x32xf32>, vector<32x128xf32>, vector<8x128xf32> -> vector<8x128xf32>
    %154 = arith.addf %152, %153 : vector<8x128xf32>
    %155 = arith.mulf %154, %14 : vector<8x128xf32>
    %156 = math.tanh %155 : vector<8x128xf32>
    %cst_34 = arith.constant 5.000000e-01 : f32
    %157 = vector.broadcast %cst_34 : f32 to vector<8x128xf32>
    %158 = arith.mulf %157, %156 : vector<8x128xf32>
    %cst_35 = arith.constant 5.000000e-01 : f32
    %159 = vector.broadcast %cst_35 : f32 to vector<8x128xf32>
    %160 = arith.addf %158, %159 : vector<8x128xf32>
    %161 = arith.select %11, %156, %160 : vector<8x128xi1>, vector<8x128xf32>
    %162 = vector.extract_strided_slice %161 {offsets = [0, 0], sizes = [8, 32], strides = [1, 1]} : vector<8x128xf32> to vector<8x32xf32>
    %163 = vector.extract_strided_slice %161 {offsets = [0, 32], sizes = [8, 32], strides = [1, 1]} : vector<8x128xf32> to vector<8x32xf32>
    %164 = vector.extract_strided_slice %161 {offsets = [0, 64], sizes = [8, 32], strides = [1, 1]} : vector<8x128xf32> to vector<8x32xf32>
    %165 = vector.extract_strided_slice %161 {offsets = [0, 96], sizes = [8, 32], strides = [1, 1]} : vector<8x128xf32> to vector<8x32xf32>
    %166 = arith.mulf %163, %149 : vector<8x32xf32>
    %167 = arith.mulf %162, %164 : vector<8x32xf32>
    %168 = arith.addf %166, %167 : vector<8x32xf32>
    %169 = math.tanh %168 : vector<8x32xf32>
    %170 = arith.mulf %165, %169 : vector<8x32xf32>
    %171 = tpu.concatenate %37, %56, %75, %94, %113, %132, %151, %170 in 0 : vector<8x32xf32>, vector<8x32xf32>, vector<8x32xf32>, vector<8x32xf32>, vector<8x32xf32>, vector<8x32xf32>, vector<8x32xf32>, vector<8x32xf32> -> vector<64x32xf32>
    %c1 = arith.constant 1 : index
    %c0_36 = arith.constant 0 : index
    %c0_37 = arith.constant 0 : index
    %172 = vector.load %arg3[%c1, %c0_36, %c0_37] : memref<2x32x128xf32, #tpu.memory_space<vmem>>, vector<1x32x128xf32>
    %173 = vector.shape_cast %172 : vector<1x32x128xf32> to vector<32x128xf32>
    %cst_38 = arith.constant dense<0.000000e+00> : vector<64x128xf32>
    %174 = tpu.matmul %171, %173, %cst_38 {dimension_numbers = #tpu.dot_dimension_numbers<[1], [0], [0], [1], [0, 0, 1, 1], [], []>} : vector<64x32xf32>, vector<32x128xf32>, vector<64x128xf32> -> vector<64x128xf32>
    %c1_39 = arith.constant 1 : index
    %c0_40 = arith.constant 0 : index
    %c0_41 = arith.constant 0 : index
    %175 = vector.load %arg5[%c1_39, %c0_40, %c0_41] : memref<2x1x128xf32, #tpu.memory_space<vmem>>, vector<1x1x128xf32>
    %176 = vector.shape_cast %175 : vector<1x1x128xf32> to vector<1x128xf32>
    %177 = vector.broadcast %176 : vector<1x128xf32> to vector<64x128xf32>
    %178 = arith.addf %174, %177 : vector<64x128xf32>
    %c1_42 = arith.constant 1 : index
    %c0_43 = arith.constant 0 : index
    %c0_44 = arith.constant 0 : index
    %179 = vector.load %arg4[%c1_42, %c0_43, %c0_44] : memref<2x32x128xf32, #tpu.memory_space<vmem>>, vector<1x32x128xf32>
    %180 = vector.shape_cast %179 : vector<1x32x128xf32> to vector<32x128xf32>
    %cst_45 = arith.constant 0.000000e+00 : f32
    %181 = vector.broadcast %cst_45 : f32 to vector<8x32xf32>
    %cst_46 = arith.constant 0.000000e+00 : f32
    %182 = vector.broadcast %cst_46 : f32 to vector<8x32xf32>
    %183 = vector.extract_strided_slice %178 {offsets = [0, 0], sizes = [8, 128], strides = [1, 1]} : vector<64x128xf32> to vector<8x128xf32>
    %cst_47 = arith.constant dense<0.000000e+00> : vector<8x128xf32>
    %184 = tpu.matmul %181, %180, %cst_47 {dimension_numbers = #tpu.dot_dimension_numbers<[1], [0], [0], [1], [0, 0, 1, 1], [], []>} : vector<8x32xf32>, vector<32x128xf32>, vector<8x128xf32> -> vector<8x128xf32>
    %185 = arith.addf %183, %184 : vector<8x128xf32>
    %186 = arith.mulf %185, %14 : vector<8x128xf32>
    %187 = math.tanh %186 : vector<8x128xf32>
    %cst_48 = arith.constant 5.000000e-01 : f32
    %188 = vector.broadcast %cst_48 : f32 to vector<8x128xf32>
    %189 = arith.mulf %188, %187 : vector<8x128xf32>
    %cst_49 = arith.constant 5.000000e-01 : f32
    %190 = vector.broadcast %cst_49 : f32 to vector<8x128xf32>
    %191 = arith.addf %189, %190 : vector<8x128xf32>
    %192 = arith.select %11, %187, %191 : vector<8x128xi1>, vector<8x128xf32>
    %193 = vector.extract_strided_slice %192 {offsets = [0, 0], sizes = [8, 32], strides = [1, 1]} : vector<8x128xf32> to vector<8x32xf32>
    %194 = vector.extract_strided_slice %192 {offsets = [0, 32], sizes = [8, 32], strides = [1, 1]} : vector<8x128xf32> to vector<8x32xf32>
    %195 = vector.extract_strided_slice %192 {offsets = [0, 64], sizes = [8, 32], strides = [1, 1]} : vector<8x128xf32> to vector<8x32xf32>
    %196 = vector.extract_strided_slice %192 {offsets = [0, 96], sizes = [8, 32], strides = [1, 1]} : vector<8x128xf32> to vector<8x32xf32>
    %197 = arith.mulf %194, %182 : vector<8x32xf32>
    %198 = arith.mulf %193, %195 : vector<8x32xf32>
    %199 = arith.addf %197, %198 : vector<8x32xf32>
    %200 = math.tanh %199 : vector<8x32xf32>
    %201 = arith.mulf %196, %200 : vector<8x32xf32>
    %202 = vector.extract_strided_slice %178 {offsets = [8, 0], sizes = [8, 128], strides = [1, 1]} : vector<64x128xf32> to vector<8x128xf32>
    %cst_50 = arith.constant dense<0.000000e+00> : vector<8x128xf32>
    %203 = tpu.matmul %201, %180, %cst_50 {dimension_numbers = #tpu.dot_dimension_numbers<[1], [0], [0], [1], [0, 0, 1, 1], [], []>} : vector<8x32xf32>, vector<32x128xf32>, vector<8x128xf32> -> vector<8x128xf32>
    %204 = arith.addf %202, %203 : vector<8x128xf32>
    %205 = arith.mulf %204, %14 : vector<8x128xf32>
    %206 = math.tanh %205 : vector<8x128xf32>
    %cst_51 = arith.constant 5.000000e-01 : f32
    %207 = vector.broadcast %cst_51 : f32 to vector<8x128xf32>
    %208 = arith.mulf %207, %206 : vector<8x128xf32>
    %cst_52 = arith.constant 5.000000e-01 : f32
    %209 = vector.broadcast %cst_52 : f32 to vector<8x128xf32>
    %210 = arith.addf %208, %209 : vector<8x128xf32>
    %211 = arith.select %11, %206, %210 : vector<8x128xi1>, vector<8x128xf32>
    %212 = vector.extract_strided_slice %211 {offsets = [0, 0], sizes = [8, 32], strides = [1, 1]} : vector<8x128xf32> to vector<8x32xf32>
    %213 = vector.extract_strided_slice %211 {offsets = [0, 32], sizes = [8, 32], strides = [1, 1]} : vector<8x128xf32> to vector<8x32xf32>
    %214 = vector.extract_strided_slice %211 {offsets = [0, 64], sizes = [8, 32], strides = [1, 1]} : vector<8x128xf32> to vector<8x32xf32>
    %215 = vector.extract_strided_slice %211 {offsets = [0, 96], sizes = [8, 32], strides = [1, 1]} : vector<8x128xf32> to vector<8x32xf32>
    %216 = arith.mulf %213, %199 : vector<8x32xf32>
    %217 = arith.mulf %212, %214 : vector<8x32xf32>
    %218 = arith.addf %216, %217 : vector<8x32xf32>
    %219 = math.tanh %218 : vector<8x32xf32>
    %220 = arith.mulf %215, %219 : vector<8x32xf32>
    %221 = vector.extract_strided_slice %178 {offsets = [16, 0], sizes = [8, 128], strides = [1, 1]} : vector<64x128xf32> to vector<8x128xf32>
    %cst_53 = arith.constant dense<0.000000e+00> : vector<8x128xf32>
    %222 = tpu.matmul %220, %180, %cst_53 {dimension_numbers = #tpu.dot_dimension_numbers<[1], [0], [0], [1], [0, 0, 1, 1], [], []>} : vector<8x32xf32>, vector<32x128xf32>, vector<8x128xf32> -> vector<8x128xf32>
    %223 = arith.addf %221, %222 : vector<8x128xf32>
    %224 = arith.mulf %223, %14 : vector<8x128xf32>
    %225 = math.tanh %224 : vector<8x128xf32>
    %cst_54 = arith.constant 5.000000e-01 : f32
    %226 = vector.broadcast %cst_54 : f32 to vector<8x128xf32>
    %227 = arith.mulf %226, %225 : vector<8x128xf32>
    %cst_55 = arith.constant 5.000000e-01 : f32
    %228 = vector.broadcast %cst_55 : f32 to vector<8x128xf32>
    %229 = arith.addf %227, %228 : vector<8x128xf32>
    %230 = arith.select %11, %225, %229 : vector<8x128xi1>, vector<8x128xf32>
    %231 = vector.extract_strided_slice %230 {offsets = [0, 0], sizes = [8, 32], strides = [1, 1]} : vector<8x128xf32> to vector<8x32xf32>
    %232 = vector.extract_strided_slice %230 {offsets = [0, 32], sizes = [8, 32], strides = [1, 1]} : vector<8x128xf32> to vector<8x32xf32>
    %233 = vector.extract_strided_slice %230 {offsets = [0, 64], sizes = [8, 32], strides = [1, 1]} : vector<8x128xf32> to vector<8x32xf32>
    %234 = vector.extract_strided_slice %230 {offsets = [0, 96], sizes = [8, 32], strides = [1, 1]} : vector<8x128xf32> to vector<8x32xf32>
    %235 = arith.mulf %232, %218 : vector<8x32xf32>
    %236 = arith.mulf %231, %233 : vector<8x32xf32>
    %237 = arith.addf %235, %236 : vector<8x32xf32>
    %238 = math.tanh %237 : vector<8x32xf32>
    %239 = arith.mulf %234, %238 : vector<8x32xf32>
    %240 = vector.extract_strided_slice %178 {offsets = [24, 0], sizes = [8, 128], strides = [1, 1]} : vector<64x128xf32> to vector<8x128xf32>
    %cst_56 = arith.constant dense<0.000000e+00> : vector<8x128xf32>
    %241 = tpu.matmul %239, %180, %cst_56 {dimension_numbers = #tpu.dot_dimension_numbers<[1], [0], [0], [1], [0, 0, 1, 1], [], []>} : vector<8x32xf32>, vector<32x128xf32>, vector<8x128xf32> -> vector<8x128xf32>
    %242 = arith.addf %240, %241 : vector<8x128xf32>
    %243 = arith.mulf %242, %14 : vector<8x128xf32>
    %244 = math.tanh %243 : vector<8x128xf32>
    %cst_57 = arith.constant 5.000000e-01 : f32
    %245 = vector.broadcast %cst_57 : f32 to vector<8x128xf32>
    %246 = arith.mulf %245, %244 : vector<8x128xf32>
    %cst_58 = arith.constant 5.000000e-01 : f32
    %247 = vector.broadcast %cst_58 : f32 to vector<8x128xf32>
    %248 = arith.addf %246, %247 : vector<8x128xf32>
    %249 = arith.select %11, %244, %248 : vector<8x128xi1>, vector<8x128xf32>
    %250 = vector.extract_strided_slice %249 {offsets = [0, 0], sizes = [8, 32], strides = [1, 1]} : vector<8x128xf32> to vector<8x32xf32>
    %251 = vector.extract_strided_slice %249 {offsets = [0, 32], sizes = [8, 32], strides = [1, 1]} : vector<8x128xf32> to vector<8x32xf32>
    %252 = vector.extract_strided_slice %249 {offsets = [0, 64], sizes = [8, 32], strides = [1, 1]} : vector<8x128xf32> to vector<8x32xf32>
    %253 = vector.extract_strided_slice %249 {offsets = [0, 96], sizes = [8, 32], strides = [1, 1]} : vector<8x128xf32> to vector<8x32xf32>
    %254 = arith.mulf %251, %237 : vector<8x32xf32>
    %255 = arith.mulf %250, %252 : vector<8x32xf32>
    %256 = arith.addf %254, %255 : vector<8x32xf32>
    %257 = math.tanh %256 : vector<8x32xf32>
    %258 = arith.mulf %253, %257 : vector<8x32xf32>
    %259 = vector.extract_strided_slice %178 {offsets = [32, 0], sizes = [8, 128], strides = [1, 1]} : vector<64x128xf32> to vector<8x128xf32>
    %cst_59 = arith.constant dense<0.000000e+00> : vector<8x128xf32>
    %260 = tpu.matmul %258, %180, %cst_59 {dimension_numbers = #tpu.dot_dimension_numbers<[1], [0], [0], [1], [0, 0, 1, 1], [], []>} : vector<8x32xf32>, vector<32x128xf32>, vector<8x128xf32> -> vector<8x128xf32>
    %261 = arith.addf %259, %260 : vector<8x128xf32>
    %262 = arith.mulf %261, %14 : vector<8x128xf32>
    %263 = math.tanh %262 : vector<8x128xf32>
    %cst_60 = arith.constant 5.000000e-01 : f32
    %264 = vector.broadcast %cst_60 : f32 to vector<8x128xf32>
    %265 = arith.mulf %264, %263 : vector<8x128xf32>
    %cst_61 = arith.constant 5.000000e-01 : f32
    %266 = vector.broadcast %cst_61 : f32 to vector<8x128xf32>
    %267 = arith.addf %265, %266 : vector<8x128xf32>
    %268 = arith.select %11, %263, %267 : vector<8x128xi1>, vector<8x128xf32>
    %269 = vector.extract_strided_slice %268 {offsets = [0, 0], sizes = [8, 32], strides = [1, 1]} : vector<8x128xf32> to vector<8x32xf32>
    %270 = vector.extract_strided_slice %268 {offsets = [0, 32], sizes = [8, 32], strides = [1, 1]} : vector<8x128xf32> to vector<8x32xf32>
    %271 = vector.extract_strided_slice %268 {offsets = [0, 64], sizes = [8, 32], strides = [1, 1]} : vector<8x128xf32> to vector<8x32xf32>
    %272 = vector.extract_strided_slice %268 {offsets = [0, 96], sizes = [8, 32], strides = [1, 1]} : vector<8x128xf32> to vector<8x32xf32>
    %273 = arith.mulf %270, %256 : vector<8x32xf32>
    %274 = arith.mulf %269, %271 : vector<8x32xf32>
    %275 = arith.addf %273, %274 : vector<8x32xf32>
    %276 = math.tanh %275 : vector<8x32xf32>
    %277 = arith.mulf %272, %276 : vector<8x32xf32>
    %278 = vector.extract_strided_slice %178 {offsets = [40, 0], sizes = [8, 128], strides = [1, 1]} : vector<64x128xf32> to vector<8x128xf32>
    %cst_62 = arith.constant dense<0.000000e+00> : vector<8x128xf32>
    %279 = tpu.matmul %277, %180, %cst_62 {dimension_numbers = #tpu.dot_dimension_numbers<[1], [0], [0], [1], [0, 0, 1, 1], [], []>} : vector<8x32xf32>, vector<32x128xf32>, vector<8x128xf32> -> vector<8x128xf32>
    %280 = arith.addf %278, %279 : vector<8x128xf32>
    %281 = arith.mulf %280, %14 : vector<8x128xf32>
    %282 = math.tanh %281 : vector<8x128xf32>
    %cst_63 = arith.constant 5.000000e-01 : f32
    %283 = vector.broadcast %cst_63 : f32 to vector<8x128xf32>
    %284 = arith.mulf %283, %282 : vector<8x128xf32>
    %cst_64 = arith.constant 5.000000e-01 : f32
    %285 = vector.broadcast %cst_64 : f32 to vector<8x128xf32>
    %286 = arith.addf %284, %285 : vector<8x128xf32>
    %287 = arith.select %11, %282, %286 : vector<8x128xi1>, vector<8x128xf32>
    %288 = vector.extract_strided_slice %287 {offsets = [0, 0], sizes = [8, 32], strides = [1, 1]} : vector<8x128xf32> to vector<8x32xf32>
    %289 = vector.extract_strided_slice %287 {offsets = [0, 32], sizes = [8, 32], strides = [1, 1]} : vector<8x128xf32> to vector<8x32xf32>
    %290 = vector.extract_strided_slice %287 {offsets = [0, 64], sizes = [8, 32], strides = [1, 1]} : vector<8x128xf32> to vector<8x32xf32>
    %291 = vector.extract_strided_slice %287 {offsets = [0, 96], sizes = [8, 32], strides = [1, 1]} : vector<8x128xf32> to vector<8x32xf32>
    %292 = arith.mulf %289, %275 : vector<8x32xf32>
    %293 = arith.mulf %288, %290 : vector<8x32xf32>
    %294 = arith.addf %292, %293 : vector<8x32xf32>
    %295 = math.tanh %294 : vector<8x32xf32>
    %296 = arith.mulf %291, %295 : vector<8x32xf32>
    %297 = vector.extract_strided_slice %178 {offsets = [48, 0], sizes = [8, 128], strides = [1, 1]} : vector<64x128xf32> to vector<8x128xf32>
    %cst_65 = arith.constant dense<0.000000e+00> : vector<8x128xf32>
    %298 = tpu.matmul %296, %180, %cst_65 {dimension_numbers = #tpu.dot_dimension_numbers<[1], [0], [0], [1], [0, 0, 1, 1], [], []>} : vector<8x32xf32>, vector<32x128xf32>, vector<8x128xf32> -> vector<8x128xf32>
    %299 = arith.addf %297, %298 : vector<8x128xf32>
    %300 = arith.mulf %299, %14 : vector<8x128xf32>
    %301 = math.tanh %300 : vector<8x128xf32>
    %cst_66 = arith.constant 5.000000e-01 : f32
    %302 = vector.broadcast %cst_66 : f32 to vector<8x128xf32>
    %303 = arith.mulf %302, %301 : vector<8x128xf32>
    %cst_67 = arith.constant 5.000000e-01 : f32
    %304 = vector.broadcast %cst_67 : f32 to vector<8x128xf32>
    %305 = arith.addf %303, %304 : vector<8x128xf32>
    %306 = arith.select %11, %301, %305 : vector<8x128xi1>, vector<8x128xf32>
    %307 = vector.extract_strided_slice %306 {offsets = [0, 0], sizes = [8, 32], strides = [1, 1]} : vector<8x128xf32> to vector<8x32xf32>
    %308 = vector.extract_strided_slice %306 {offsets = [0, 32], sizes = [8, 32], strides = [1, 1]} : vector<8x128xf32> to vector<8x32xf32>
    %309 = vector.extract_strided_slice %306 {offsets = [0, 64], sizes = [8, 32], strides = [1, 1]} : vector<8x128xf32> to vector<8x32xf32>
    %310 = vector.extract_strided_slice %306 {offsets = [0, 96], sizes = [8, 32], strides = [1, 1]} : vector<8x128xf32> to vector<8x32xf32>
    %311 = arith.mulf %308, %294 : vector<8x32xf32>
    %312 = arith.mulf %307, %309 : vector<8x32xf32>
    %313 = arith.addf %311, %312 : vector<8x32xf32>
    %314 = math.tanh %313 : vector<8x32xf32>
    %315 = arith.mulf %310, %314 : vector<8x32xf32>
    %316 = vector.extract_strided_slice %178 {offsets = [56, 0], sizes = [8, 128], strides = [1, 1]} : vector<64x128xf32> to vector<8x128xf32>
    %cst_68 = arith.constant dense<0.000000e+00> : vector<8x128xf32>
    %317 = tpu.matmul %315, %180, %cst_68 {dimension_numbers = #tpu.dot_dimension_numbers<[1], [0], [0], [1], [0, 0, 1, 1], [], []>} : vector<8x32xf32>, vector<32x128xf32>, vector<8x128xf32> -> vector<8x128xf32>
    %318 = arith.addf %316, %317 : vector<8x128xf32>
    %319 = arith.mulf %318, %14 : vector<8x128xf32>
    %320 = math.tanh %319 : vector<8x128xf32>
    %cst_69 = arith.constant 5.000000e-01 : f32
    %321 = vector.broadcast %cst_69 : f32 to vector<8x128xf32>
    %322 = arith.mulf %321, %320 : vector<8x128xf32>
    %cst_70 = arith.constant 5.000000e-01 : f32
    %323 = vector.broadcast %cst_70 : f32 to vector<8x128xf32>
    %324 = arith.addf %322, %323 : vector<8x128xf32>
    %325 = arith.select %11, %320, %324 : vector<8x128xi1>, vector<8x128xf32>
    %326 = vector.extract_strided_slice %325 {offsets = [0, 0], sizes = [8, 32], strides = [1, 1]} : vector<8x128xf32> to vector<8x32xf32>
    %327 = vector.extract_strided_slice %325 {offsets = [0, 32], sizes = [8, 32], strides = [1, 1]} : vector<8x128xf32> to vector<8x32xf32>
    %328 = vector.extract_strided_slice %325 {offsets = [0, 64], sizes = [8, 32], strides = [1, 1]} : vector<8x128xf32> to vector<8x32xf32>
    %329 = vector.extract_strided_slice %325 {offsets = [0, 96], sizes = [8, 32], strides = [1, 1]} : vector<8x128xf32> to vector<8x32xf32>
    %330 = arith.mulf %327, %313 : vector<8x32xf32>
    %331 = arith.mulf %326, %328 : vector<8x32xf32>
    %332 = arith.addf %330, %331 : vector<8x32xf32>
    %333 = math.tanh %332 : vector<8x32xf32>
    %334 = arith.mulf %329, %333 : vector<8x32xf32>
    %c0_71 = arith.constant 0 : index
    %c0_72 = arith.constant 0 : index
    %335 = vector.load %arg6[%c0_71, %c0_72] : memref<32x128xf32, #tpu.memory_space<vmem>>, vector<32x128xf32>
    %cst_73 = arith.constant dense<0.000000e+00> : vector<8x128xf32>
    %336 = tpu.matmul %334, %335, %cst_73 {dimension_numbers = #tpu.dot_dimension_numbers<[1], [0], [0], [1], [0, 0, 1, 1], [], []>} : vector<8x32xf32>, vector<32x128xf32>, vector<8x128xf32> -> vector<8x128xf32>
    %c0_74 = arith.constant 0 : index
    %c0_75 = arith.constant 0 : index
    %337 = vector.load %arg7[%c0_74, %c0_75] : memref<1x128xf32, #tpu.memory_space<vmem>>, vector<1x128xf32>
    %338 = vector.broadcast %337 : vector<1x128xf32> to vector<8x128xf32>
    %339 = arith.addf %336, %338 : vector<8x128xf32>
    %c0_76 = arith.constant 0 : index
    %c0_77 = arith.constant 0 : index
    %340 = vector.load %arg8[%c0_76, %c0_77] : memref<8x128xf32, #tpu.memory_space<vmem>>, vector<8x128xf32>
    tpu.vector_store %arg8[%c0_76, %c0_77], %339 {strides = array<i32>} : memref<8x128xf32, #tpu.memory_space<vmem>>, vector<8x128xf32>,
    return
  }
}

</mosaic_0001>

<bundles_post_ra>
// kernel: tpu_custom_call.1
= control target key start
LH: loop header
LB: loop body
LE: loop exit
PB: predicated region body
PF: predicated region fallthrough
CT: control target
= control target key end

     0   :  { %13 = vsyncpa [#allocation3], 0  ;;  %s3044_s0 = inlined_call_operand.vmem [shape: f32[64,32], index: 0, kind: input, shape index: {}]   ;;  %s3045_s1 = inlined_call_operand.vmem [shape: f32[32,128], index: 1, kind: input, shape index: {}]   ;;  %s3046_s2 = inlined_call_operand.vmem [shape: f32[1,128], index: 2, kind: input, shape index: {}]   ;;  %s3047_s3 = inlined_call_operand.vmem [shape: f32[2,32,128], index: 3, kind: input, shape index: {}]   ;;  %s3048_s4 = inlined_call_operand.hbm [shape: f32[2,32,128], index: 4, kind: input, shape index: {}]   ;;  %s3049_s5 = inlined_call_operand.vmem [shape: f32[2,1,128], index: 5, kind: input, shape index: {}]   ;;  %s3050_s6 = inlined_call_operand.hbm [shape: f32[32,128], index: 6, kind: input, shape index: {}]   ;;  %s3051_s7 = inlined_call_operand.vmem [shape: f32[1,128], index: 7, kind: input, shape index: {}]   ;;  %s3052_s8 = inlined_call_operand.hbm [shape: f32[8,128], index: 8, kind: output, shape index: {}]  }
   0x1   :  { %14 = vsyncpa [#allocation6], 0 }
   0x2   :  { %15 = vsyncpa [#allocation4], 0  ;;  %s2524_s27 = smov [#allocation2]  }
   0x3   :  { %s29_s28 = sshll.u32 %s2524_s27, 4  ;;  %s30_s28 = int_to_ptr.vmem [resolvable:$true] %s29_s28 }
   0x4   :  { %s2466_s29 = scalar_lea.vmem %s30_s28, 1024  ;;  %p2471_p1 = scmp.lt.s32.totalorder %s30_s28, %s30_s28 }
   0x5   :  { %p2467_p0 = scmp.ne.s32.totalorder %s30_s28, %s2466_s29  ;;  %p2472_p2 = scmp.lt.s32.totalorder %s2466_s29, %s2466_s29 }
   0x7   :  { %p2473_p3 = por %p2472_p2, %p2471_p1 }
   0x9   :  { %p2474_p4 = pnand %p2473_p3, %p2467_p0 }
   0xb   :  { %2477 = shalt.err (!%p2474_p4)
}
   0xc   :  { %s2525_s30 = smov 128   ;;  %s2526_s9 = smov 8  }
   0xd   :  { %35 = dma.hbm_to_vmem [thread:$0]  %s3048_s4, 1024, %s30_s28, [#allocation3], %s2525_s30, %s2525_s30, %s2526_s9  }
   0xe   :  { %s2527_s12 = smov [#allocation5]  }
   0xf   :  { %s43_s13 = sshll.u32 %s2527_s12, 4  ;;  %s44_s13 = int_to_ptr.vmem [resolvable:$true] %s43_s13 }
  0x10   :  { %s2486_s14 = scalar_lea.vmem %s44_s13, 512  ;;  %p2491_p6 = scmp.lt.s32.totalorder %s44_s13, %s44_s13 }
  0x11   :  { %p2487_p5 = scmp.ne.s32.totalorder %s44_s13, %s2486_s14  ;;  %p2492_p7 = scmp.lt.s32.totalorder %s2486_s14, %s2486_s14 }
  0x13   :  { %p2493_p8 = por %p2492_p7, %p2491_p6 }
  0x15   :  { %p2494_p9 = pnand %p2493_p8, %p2487_p5 }
  0x17   :  { %2497 = shalt.err (!%p2494_p9)
}
  0x18   :  { %49 = dma.hbm_to_vmem [thread:$0]  %s3050_s6, 512, %s44_s13, [#allocation6], %s2525_s30, %s2525_s30, %s2526_s9  }
  0x19   :  { %2518 = dma.done.wait [#allocation3], 1024  }
  0x1a   :  { %2519 = vsyncadd [#allocation3], 4294966272 }
  0x1b   :  { %2520 = dma.done.wait [#allocation6], 512  }
  0x1c   :  { %2521 = vsyncadd [#allocation6], 4294966784  ;;  %v2528_v0 = vmov 0.0   ;;  %vm2529_vm0 = vmmov 0   ;;  %v69_v1 = vld [vmem:[%s3045_s1 + $0x18] sm:$0xff]  ;;  %v68_v2 = vld [vmem:[%s3045_s1 + $0x10] sm:$0xff]  ;;  %v207_v11 = vlaneseq }
  0x1d   :  { %2177 = vmatprep.subr.mxu1 %v2528_v0  ;;  %2185 = vmatprep.mubr.msk.f32.mxu1 %vm2529_vm0, %v2528_v0  ;;  %v2594_v3 = vld [vmem:[#allocation2 + $0x18] sm:$0xff]  ;;  %v2597_v4 = vld [vmem:[#allocation2 + $0x10] sm:$0xff]  ;;  %v67_v5 = vld [vmem:[%s3045_s1 + $0x8] sm:$0xff]  ;;  %vm77_vm1 = vcmask 261120   ;;  %v2530_v20 = vmov 0.5   ;;  %s2532_s28 = smov 32  }
  0x1e   :  { %2157 = vmatprep.subr.mxu0 %v69_v1  ;;  %2178 = vmatpush3.msra.mxu1 %v2594_v3  ;;  %v58_v6 = vld [vmem:[%s3044_s0] sm:$0xff]  ;;  %v2607_v7 = vld [vmem:[#allocation2 + $0x8] sm:$0xff]  ;;  %v208_v12 = vand.u32 127, %v207_v11  ;;  %v60_v51 = vld [vmem:[%s3044_s0 + $0x10] sm:$0xff]  ;;  %s2533_s26 = smov [#allocation7]  }
  0x1f   :  { %2158 = vmatpush3.msra.mxu0 %v69_v1  ;;  %2179 = vmatprep.subr.mxu1 %v2528_v0  ;;  %v66_v8 = vld [vmem:[%s3045_s1] sm:$0xff]  ;;  %v59_v10 = vld [vmem:[%s3044_s0 + $0x8] sm:$0xff]  ;;  %v61_v52 = vld [vmem:[%s3044_s0 + $0x18] sm:$0xff]  ;;  %s1999_s1 = sshll.u32 %s2533_s26, 4  ;;  %s2000_s1 = int_to_ptr.vmem [resolvable:$true] %s1999_s1 }
  0x20   :  { %2159 = vmatprep.subr.mxu0 %v68_v2  ;;  %2180 = vmatpush3.msra.mxu1 %v2597_v4  ;;  %v2614_v9 = vld [vmem:[#allocation2] sm:$0xff]  ;;  %vm209_vm2 = vcmp.ge.s32.totalorder %v208_v12, 64  ;;  %vm210_vm3 = vcmp.lt.s32.totalorder %v208_v12, 96  ;;  %v63_v54 = vld [vmem:[%s3044_s0 + $0x28] sm:$0xff]  ;;  %v64_v55 = vld [vmem:[%s3044_s0 + $0x30] sm:$0xff]  ;;  %s2498_s27 = scalar_lea.vmem %s2000_s1, 128  ;;  %p2503_p11 = scmp.lt.s32.totalorder %s2000_s1, %s2000_s1 }
  0x21   :  { %2160 = vmatpush3.msra.mxu0 %v68_v2  ;;  %2181 = vmatprep.subr.mxu1 %v2528_v0  ;;  %vm2644_vm4 = vmand %vm209_vm2, %vm210_vm3  ;;  %v2651_v16 = vld [vmem:[%s3046_s2] ss:$0 sm:$0xff]  ;;  %s2531_s2 = smov 64   ;;  %v65_v56 = vld [vmem:[%s3044_s0 + $0x38] sm:$0xff]  ;;  %p2499_p10 = scmp.ne.s32.totalorder %s2000_s1, %s2498_s27 }
  0x22   :  { %2161 = vmatprep.subr.mxu0 %v67_v5  ;;  %2165 = vmatprep.mubr.msk.f32.mxu0 %vm77_vm1, %v58_v6  ;;  %v2656_v21 = vsel %vm2644_vm4, 1.0, %v2530_v20  ;;  %v62_v53 = vld [vmem:[%s3044_s0 + $0x20] sm:$0xff]  ;;  %p2504_p12 = scmp.lt.s32.totalorder %s2498_s27, %s2498_s27 }
  0x23   :  { %2162 = vmatpush3.msra.mxu0 %v67_v5  ;;  %2182 = vmatpush3.msra.mxu1 %v2607_v7  ;;  %v1906_v15 = vld [vmem:[#allocation5] sm:$0xff] }
  0x24   :  { %2163 = vmatprep.subr.mxu0 %v66_v8  ;;  %2183 = vmatprep.subr.mxu1 %v2528_v0  ;;  %p2505_p13 = por %p2504_p12, %p2503_p11 }
  0x25   :  { %2164 = vmatpush3.msra.mxu0 %v66_v8  ;;  %2184 = vmatpush3.msra.mxu1 %v2614_v9 }
  0x26   :  { %2166 = vmatmul.mubr.msk.f32.vlgmr.msra.gmra.mxu0 %vm77_vm1, %v59_v10  ;;  %2186 = vmatmul.mubr.f32.vlgmr.msra.gmra.mxu1 %v2528_v0  ;;  %p2506_p0 = pnand %p2505_p13, %p2499_p10 }
  0x27   :  { %2188 = vmatprep.subr.mxu1 %v2528_v0  ;;  %2196 = vmatprep.mubr.msk.f32.mxu1 %vm2529_vm0, %v2528_v0 }
  0x28   :  { %2189 = vmatpush3.msra.mxu1 %v2594_v3  ;;  %2199 = vmatprep.subr.mxu0 %v2528_v0 }
  0x29   :  { %2190 = vmatprep.subr.mxu1 %v2528_v0  ;;  %2200 = vmatpush3.msra.mxu0 %v2594_v3 }
  0x2a   :  { %2191 = vmatpush3.msra.mxu1 %v2597_v4  ;;  %2201 = vmatprep.subr.mxu0 %v2528_v0 }
  0x2b   :  { %2192 = vmatprep.subr.mxu1 %v2528_v0  ;;  %2202 = vmatpush3.msra.mxu0 %v2597_v4 }
  0x2c   :  { %2193 = vmatpush3.msra.mxu1 %v2607_v7  ;;  %2203 = vmatprep.subr.mxu0 %v2528_v0 }
  0x2d   :  { %2194 = vmatprep.subr.mxu1 %v2528_v0  ;;  %2204 = vmatpush3.msra.mxu0 %v2607_v7 }
  0x2e   :  { %2195 = vmatpush3.msra.mxu1 %v2614_v9  ;;  %2205 = vmatprep.subr.mxu0 %v2528_v0 }
  0x2f   :  { %2206 = vmatpush3.msra.mxu0 %v2614_v9  ;;  %2210 = vmatprep.subr.mxu1 %v2528_v0 }
  0x30   :  { %2221 = vmatprep.subr.mxu0 %v2528_v0  ;;  %2168 = vmatprep.mubr.msk.f32.mxu0 %vm77_vm1, %v60_v51 }
  0x31   :  { %2169 = vmatmul.mubr.msk.f32.gmra.mxu0 %vm77_vm1, %v61_v52 }
  0x32   :  { %2171 = vmatprep.mubr.msk.f32.mxu0 %vm77_vm1, %v62_v53 }
  0x35   :  { %2172 = vmatmul.mubr.msk.f32.gmra.mxu0 %vm77_vm1, %v63_v54 }
  0x36   :  { %2174 = vmatprep.mubr.msk.f32.mxu0 %vm77_vm1, %v64_v55 }
  0x39   :  { %2175 = vmatmul.mubr.msk.f32.gmra.mxu0 %vm77_vm1, %v65_v56 }
  0x3a   :  { %2207 = vmatprep.mubr.msk.f32.mxu0 %vm2529_vm0, %v2528_v0 }
  0xe6   :  { %v2167_v13 = vpop.f32.mrf.mxu0  ;;  %v286_v14 = vpop.f32.mrf.mxu1 }
  0xe7   :  { %v174_v37 = vadd.f32 %v2167_v13, %v2651_v16 }
  0xe8   :  { %v168_v17 = vpop.f32.mrf.mxu0  ;;  %v2187_v18 = vpop.f32.mrf.mxu1 }
  0xe9   :  { %v169_v19 = vadd.f32 %v2651_v16, %v168_v17 }
  0xeb   :  { %v290_v22 = vadd.f32 %v286_v14, %v169_v19 }
  0xed   :  { %v291_v23 = vmul.f32 %v290_v22, %v2656_v21 }
  0xef   :  { %2394 = vtanh.f32 %v291_v23 }
  0xf1   :  { %v2170_v61 = vpop.f32.mrf.mxu0 }
  0xf3   :  { %v178_v62 = vpop.f32.mrf.mxu0 }
  0xf4   :  { %v179_v6 = vadd.f32 %v2651_v16, %v178_v62 }
  0xf5   :  { %v2727_v63 = vpop.f32.mrf.mxu0 }
  0xf7   :  { %v2729_v1 = vpop.f32.mrf.mxu0 }
  0xf9   :  { %v2731_v2 = vpop.f32.mrf.mxu0 }
  0xfb   :  { %v2733_v5 = vpop.f32.mrf.mxu0 }
  0xfc   :  { %v2395_v24 = vpop.eup %2394 }
  0xfd   :  { %v293_v25 = vmul.f32 0.5, %v2395_v24 }
  0xff   :  { %v294_v26 = vadd.f32 0.5, %v293_v25 }
 0x101   :  { %v295_v27 = vsel %vm2644_vm4, %v2395_v24, %v294_v26 }
 0x102   :  { %298 = vrot.lane.b32.xlu0 %v295_v27, %s2531_s2  ;;  %v296_v30 = vmul.f32 0.0, %v295_v27 }
 0x174   :  { %v299_v28 = vpop.permute.xlu0 %298 }
 0x175   :  { %v301_v29 = vmul.f32 %v299_v28, %v295_v27 }
 0x177   :  { %303 = vrot.lane.b32.xlu0 %v301_v29, %s2532_s28  ;;  %v184_v29 = vadd.f32 %v2170_v61, %v2651_v16 }
 0x1e9   :  { %v304_v31 = vpop.permute.xlu0 %303 }
 0x1ea   :  { %v306_v32 = vadd.f32 %v304_v31, %v296_v30 }
 0x1ec   :  { %2396 = vtanh.f32 %v306_v32 }
 0x1f9   :  { %v2397_v33 = vpop.eup %2396 }
 0x1fa   :  { %309 = vrot.lane.b32.xlu1 %v2397_v33, %s2531_s2 }
 0x26c   :  { %v310_v34 = vpop.permute.xlu1 %309 }
 0x26d   :  { %v312_v35 = vmul.f32 %v310_v34, %v295_v27 }
 0x26f   :  { %314 = vrot.lane.b32.xlu1 %v312_v35, %s2532_s28 }
 0x2e1   :  { %v2665_v36 = vpop.permute.xlu1 %314 }
 0x2e2   :  { %2197 = vmatmul.mubr.msk.f32.vlgmr.msra.gmra.mxu1 %vm77_vm1, %v2665_v36 }
 0x2e3   :  { %2211 = vmatpush3.msra.mxu1 %v2594_v3  ;;  %2218 = vmatprep.mubr.msk.f32.mxu1 %vm2529_vm0, %v2528_v0 }
 0x2e4   :  { %2212 = vmatprep.subr.mxu1 %v2528_v0 }
 0x2e5   :  { %2213 = vmatpush3.msra.mxu1 %v2597_v4 }
 0x2e6   :  { %2214 = vmatprep.subr.mxu1 %v2528_v0 }
 0x2e7   :  { %2215 = vmatpush3.msra.mxu1 %v2607_v7 }
 0x2e8   :  { %2216 = vmatprep.subr.mxu1 %v2528_v0 }
 0x2e9   :  { %2217 = vmatpush3.msra.mxu1 %v2614_v9 }
 0x2ea   :  { %2232 = vmatprep.subr.mxu1 %v2528_v0 }
 0x3a2   :  { %v384_v38 = vpop.f32.mrf.mxu1 }
 0x3a3   :  { %v388_v39 = vadd.f32 %v384_v38, %v174_v37 }
 0x3a4   :  { %v2198_v40 = vpop.f32.mrf.mxu1 }
 0x3a5   :  { %v389_v41 = vmul.f32 %v388_v39, %v2656_v21 }
 0x3a7   :  { %2398 = vtanh.f32 %v389_v41 }
 0x3b4   :  { %v2399_v42 = vpop.eup %2398 }
 0x3b5   :  { %v391_v43 = vmul.f32 0.5, %v2399_v42 }
 0x3b7   :  { %v392_v44 = vadd.f32 0.5, %v391_v43 }
 0x3b9   :  { %v393_v45 = vsel %vm2644_vm4, %v2399_v42, %v392_v44 }
 0x3ba   :  { %396 = vrot.lane.b32.xlu0 %v393_v45, %s2531_s2  ;;  %v394_v48 = vmul.f32 %v393_v45, %v306_v32 }
 0x42c   :  { %v397_v46 = vpop.permute.xlu0 %396 }
 0x42d   :  { %v399_v47 = vmul.f32 %v397_v46, %v393_v45 }
 0x42f   :  { %401 = vrot.lane.b32.xlu1 %v399_v47, %s2532_s28 }
 0x4a1   :  { %v402_v49 = vpop.permute.xlu1 %401 }
 0x4a2   :  { %v404_v50 = vadd.f32 %v402_v49, %v394_v48  ;;  %v189_v48 = vadd.f32 %v2651_v16, %v2729_v1 }
 0x4a4   :  { %2400 = vtanh.f32 %v404_v50 }
 0x4b1   :  { %v2401_v57 = vpop.eup %2400 }
 0x4b2   :  { %407 = vrot.lane.b32.xlu0 %v2401_v57, %s2531_s2 }
 0x524   :  { %v408_v58 = vpop.permute.xlu0 %407 }
 0x525   :  { %v410_v59 = vmul.f32 %v408_v58, %v393_v45 }
 0x527   :  { %412 = vrot.lane.b32.xlu1 %v410_v59, %s2532_s28 }
 0x599   :  { %v2713_v60 = vpop.permute.xlu1 %412 }
 0x59a   :  { %2208 = vmatmul.mubr.msk.f32.vlgmr.msra.gmra.mxu0 %vm77_vm1, %v2713_v60 }
 0x59b   :  { %2222 = vmatpush3.msra.mxu0 %v2594_v3  ;;  %2229 = vmatprep.mubr.msk.f32.mxu0 %vm2529_vm0, %v2528_v0 }
 0x59c   :  { %2223 = vmatprep.subr.mxu0 %v2528_v0 }
 0x59d   :  { %2224 = vmatpush3.msra.mxu0 %v2597_v4 }
 0x59e   :  { %2225 = vmatprep.subr.mxu0 %v2528_v0 }
 0x59f   :  { %2226 = vmatpush3.msra.mxu0 %v2607_v7 }
 0x5a0   :  { %2227 = vmatprep.subr.mxu0 %v2528_v0 }
 0x5a1   :  { %2228 = vmatpush3.msra.mxu0 %v2614_v9 }
 0x5a2   :  { %2243 = vmatprep.subr.mxu0 %v2528_v0 }
 0x65a   :  { %v482_v8 = vpop.f32.mrf.mxu0 }
 0x65b   :  { %v486_v10 = vadd.f32 %v482_v8, %v179_v6 }
 0x65c   :  { %v2209_v11 = vpop.f32.mrf.mxu0 }
 0x65d   :  { %v487_v12 = vmul.f32 %v486_v10, %v2656_v21 }
 0x65f   :  { %2402 = vtanh.f32 %v487_v12 }
 0x66c   :  { %v2403_v13 = vpop.eup %2402 }
 0x66d   :  { %v489_v14 = vmul.f32 0.5, %v2403_v13 }
 0x66f   :  { %v490_v17 = vadd.f32 0.5, %v489_v14 }
 0x671   :  { %v491_v18 = vsel %vm2644_vm4, %v2403_v13, %v490_v17 }
 0x672   :  { %494 = vrot.lane.b32.xlu0 %v491_v18, %s2531_s2  ;;  %v492_v22 = vmul.f32 %v491_v18, %v404_v50 }
 0x6e4   :  { %v495_v19 = vpop.permute.xlu0 %494 }
 0x6e5   :  { %v497_v20 = vmul.f32 %v495_v19, %v491_v18 }
 0x6e7   :  { %499 = vrot.lane.b32.xlu1 %v497_v20, %s2532_s28 }
 0x759   :  { %v500_v23 = vpop.permute.xlu1 %499 }
 0x75a   :  { %v502_v24 = vadd.f32 %v500_v23, %v492_v22  ;;  %v2028_v23 = vld [vmem:[%s3047_s3 + $0x38] sm:$0xff] }
 0x75c   :  { %2404 = vtanh.f32 %v502_v24 }
 0x769   :  { %v2405_v25 = vpop.eup %2404 }
 0x76a   :  { %505 = vrot.lane.b32.xlu0 %v2405_v25, %s2531_s2 }
 0x7dc   :  { %v506_v26 = vpop.permute.xlu0 %505 }
 0x7dd   :  { %v508_v27 = vmul.f32 %v506_v26, %v491_v18 }
 0x7df   :  { %510 = vrot.lane.b32.xlu1 %v508_v27, %s2532_s28 }
 0x851   :  { %v2743_v28 = vpop.permute.xlu1 %510 }
 0x852   :  { %2219 = vmatmul.mubr.msk.f32.vlgmr.msra.gmra.mxu1 %vm77_vm1, %v2743_v28 }
 0x853   :  { %2233 = vmatpush3.msra.mxu1 %v2594_v3  ;;  %2240 = vmatprep.mubr.msk.f32.mxu1 %vm2529_vm0, %v2528_v0 }
 0x854   :  { %2234 = vmatprep.subr.mxu1 %v2528_v0 }
 0x855   :  { %2235 = vmatpush3.msra.mxu1 %v2597_v4 }
 0x856   :  { %2236 = vmatprep.subr.mxu1 %v2528_v0 }
 0x857   :  { %2237 = vmatpush3.msra.mxu1 %v2607_v7 }
 0x858   :  { %2238 = vmatprep.subr.mxu1 %v2528_v0 }
 0x859   :  { %2239 = vmatpush3.msra.mxu1 %v2614_v9 }
 0x85a   :  { %2254 = vmatprep.subr.mxu1 %v2528_v0 }
 0x912   :  { %v580_v30 = vpop.f32.mrf.mxu1 }
 0x913   :  { %v584_v31 = vadd.f32 %v580_v30, %v184_v29  ;;  %v2027_v29 = vld [vmem:[%s3047_s3 + $0x30] sm:$0xff]  ;;  %v2026_v30 = vld [vmem:[%s3047_s3 + $0x28] sm:$0xff] }
 0x914   :  { %v2220_v32 = vpop.f32.mrf.mxu1 }
 0x915   :  { %v585_v33 = vmul.f32 %v584_v31, %v2656_v21  ;;  %v2025_v31 = vld [vmem:[%s3047_s3 + $0x20] sm:$0xff] }
 0x917   :  { %2406 = vtanh.f32 %v585_v33 }
 0x924   :  { %v2407_v34 = vpop.eup %2406 }
 0x925   :  { %v587_v35 = vmul.f32 0.5, %v2407_v34 }
 0x927   :  { %v588_v37 = vadd.f32 0.5, %v587_v35 }
 0x929   :  { %v589_v38 = vsel %vm2644_vm4, %v2407_v34, %v588_v37 }
 0x92a   :  { %592 = vrot.lane.b32.xlu0 %v589_v38, %s2531_s2  ;;  %v590_v41 = vmul.f32 %v589_v38, %v502_v24 }
 0x99c   :  { %v593_v39 = vpop.permute.xlu0 %592 }
 0x99d   :  { %v595_v40 = vmul.f32 %v593_v39, %v589_v38 }
 0x99f   :  { %597 = vrot.lane.b32.xlu1 %v595_v40, %s2532_s28 }
 0xa11   :  { %v598_v42 = vpop.permute.xlu1 %597 }
 0xa12   :  { %v600_v43 = vadd.f32 %v598_v42, %v590_v41 }
 0xa14   :  { %2408 = vtanh.f32 %v600_v43 }
 0xa21   :  { %v2409_v44 = vpop.eup %2408 }
 0xa22   :  { %603 = vrot.lane.b32.xlu0 %v2409_v44, %s2531_s2  ;;  %v2842_v44 = vld [vmem:[#allocation2 + $0x38] sm:$0xff] }
 0xa94   :  { %v604_v45 = vpop.permute.xlu0 %603 }
 0xa95   :  { %v606_v46 = vmul.f32 %v604_v45, %v589_v38  ;;  %v2845_v45 = vld [vmem:[#allocation2 + $0x30] sm:$0xff] }
 0xa97   :  { %608 = vrot.lane.b32.xlu1 %v606_v46, %s2532_s28  ;;  %v2849_v46 = vld [vmem:[#allocation2 + $0x28] sm:$0xff] }
 0xb09   :  { %v2765_v47 = vpop.permute.xlu1 %608 }
 0xb0a   :  { %2230 = vmatmul.mubr.msk.f32.vlgmr.msra.gmra.mxu0 %vm77_vm1, %v2765_v47 }
 0xb0b   :  { %2244 = vmatpush3.msra.mxu0 %v2594_v3  ;;  %2251 = vmatprep.mubr.msk.f32.mxu0 %vm2529_vm0, %v2528_v0 }
 0xb0c   :  { %2245 = vmatprep.subr.mxu0 %v2528_v0 }
 0xb0d   :  { %2246 = vmatpush3.msra.mxu0 %v2597_v4 }
 0xb0e   :  { %2247 = vmatprep.subr.mxu0 %v2528_v0 }
 0xb0f   :  { %2248 = vmatpush3.msra.mxu0 %v2607_v7 }
 0xb10   :  { %2249 = vmatprep.subr.mxu0 %v2528_v0 }
 0xb11   :  { %2250 = vmatpush3.msra.mxu0 %v2614_v9 }
 0xb12   :  { %2265 = vmatprep.subr.mxu0 %v2028_v23 }
 0xbca   :  { %v678_v49 = vpop.f32.mrf.mxu0 }
 0xbcb   :  { %v682_v50 = vadd.f32 %v678_v49, %v189_v48 }
 0xbcc   :  { %v2231_v51 = vpop.f32.mrf.mxu0 }
 0xbcd   :  { %v683_v52 = vmul.f32 %v682_v50, %v2656_v21  ;;  %v204_v51 = vadd.f32 %v2731_v2, %v2651_v16 }
 0xbcf   :  { %2410 = vtanh.f32 %v683_v52 }
 0xbdc   :  { %v2411_v53 = vpop.eup %2410 }
 0xbdd   :  { %v685_v54 = vmul.f32 0.5, %v2411_v53 }
 0xbdf   :  { %v686_v55 = vadd.f32 0.5, %v685_v54 }
 0xbe1   :  { %v687_v56 = vsel %vm2644_vm4, %v2411_v53, %v686_v55 }
 0xbe2   :  { %690 = vrot.lane.b32.xlu0 %v687_v56, %s2531_s2  ;;  %v688_v59 = vmul.f32 %v687_v56, %v600_v43 }
 0xc54   :  { %v691_v57 = vpop.permute.xlu0 %690 }
 0xc55   :  { %v693_v58 = vmul.f32 %v691_v57, %v687_v56  ;;  %v2887_v57 = vld [vmem:[%s3049_s5 + $0x1] ss:$0 sm:$0xff] }
 0xc57   :  { %695 = vrot.lane.b32.xlu1 %v693_v58, %s2532_s28 }
 0xcc9   :  { %v696_v61 = vpop.permute.xlu1 %695 }
 0xcca   :  { %v698_v62 = vadd.f32 %v696_v61, %v688_v59 }
 0xccc   :  { %2412 = vtanh.f32 %v698_v62 }
 0xcd9   :  { %v2413_v1 = vpop.eup %2412 }
 0xcda   :  { %701 = vrot.lane.b32.xlu0 %v2413_v1, %s2531_s2 }
 0xd4c   :  { %v702_v6 = vpop.permute.xlu0 %701 }
 0xd4d   :  { %v704_v8 = vmul.f32 %v702_v6, %v687_v56 }
 0xd4f   :  { %706 = vrot.lane.b32.xlu1 %v704_v8, %s2532_s28 }
 0xdc1   :  { %v707_v10 = vpop.permute.xlu1 %706 }
 0xdc2   :  { %2241 = vmatmul.mubr.msk.f32.vlgmr.msra.gmra.mxu1 %vm77_vm1, %v707_v10 }
 0xdc3   :  { %2255 = vmatpush3.msra.mxu1 %v2594_v3  ;;  %2262 = vmatprep.mubr.msk.f32.mxu1 %vm2529_vm0, %v2528_v0  ;;  %v194_v3 = vadd.f32 %v2727_v63, %v2651_v16 }
 0xdc4   :  { %2256 = vmatprep.subr.mxu1 %v2528_v0 }
 0xdc5   :  { %2257 = vmatpush3.msra.mxu1 %v2597_v4 }
 0xdc6   :  { %2258 = vmatprep.subr.mxu1 %v2528_v0 }
 0xdc7   :  { %2259 = vmatpush3.msra.mxu1 %v2607_v7 }
 0xdc8   :  { %2260 = vmatprep.subr.mxu1 %v2528_v0 }
 0xdc9   :  { %2261 = vmatpush3.msra.mxu1 %v2614_v9 }
 0xdca   :  { %2285 = vmatprep.subr.mxu1 %v2528_v0 }
 0xe82   :  { %v776_v11 = vpop.f32.mrf.mxu1 }
 0xe83   :  { %v780_v12 = vadd.f32 %v776_v11, %v194_v3 }
 0xe84   :  { %v2242_v13 = vpop.f32.mrf.mxu1 }
 0xe85   :  { %v781_v14 = vmul.f32 %v780_v12, %v2656_v21 }
 0xe87   :  { %2414 = vtanh.f32 %v781_v14 }
 0xe94   :  { %v2415_v4 = vpop.eup %2414 }
 0xe95   :  { %v783_v17 = vmul.f32 0.5, %v2415_v4 }
 0xe97   :  { %v784_v18 = vadd.f32 0.5, %v783_v17 }
 0xe99   :  { %v785_v7 = vsel %vm2644_vm4, %v2415_v4, %v784_v18 }
 0xe9a   :  { %788 = vrot.lane.b32.xlu0 %v785_v7, %s2531_s2  ;;  %v786_v20 = vmul.f32 %v785_v7, %v698_v62 }
 0xf0c   :  { %v789_v9 = vpop.permute.xlu0 %788 }
 0xf0d   :  { %v791_v19 = vmul.f32 %v789_v9, %v785_v7 }
 0xf0f   :  { %793 = vrot.lane.b32.xlu1 %v791_v19, %s2532_s28 }
 0xf81   :  { %v794_v63 = vpop.permute.xlu1 %793 }
 0xf82   :  { %v796_v22 = vadd.f32 %v794_v63, %v786_v20 }
 0xf84   :  { %2416 = vtanh.f32 %v796_v22 }
 0xf91   :  { %v2417_v24 = vpop.eup %2416 }
 0xf92   :  { %799 = vrot.lane.b32.xlu0 %v2417_v24, %s2531_s2 }
0x1004   :  { %v800_v25 = vpop.permute.xlu0 %799 }
0x1005   :  { %v802_v26 = vmul.f32 %v800_v25, %v785_v7 }
0x1007   :  { %804 = vrot.lane.b32.xlu1 %v802_v26, %s2532_s28 }
0x1079   :  { %v805_v27 = vpop.permute.xlu1 %804 }
0x107a   :  { %2252 = vmatmul.mubr.msk.f32.vlgmr.msra.gmra.mxu0 %vm77_vm1, %v805_v27 }
0x107b   :  { %2266 = vmatpush3.msra.mxu0 %v2028_v23  ;;  %2273 = vmatprep.mubr.msk.f32.mxu0 %vm77_vm1, %v2665_v36  ;;  %v199_v36 = vadd.f32 %v2651_v16, %v2733_v5 }
0x107c   :  { %2267 = vmatprep.subr.mxu0 %v2027_v29 }
0x107d   :  { %2268 = vmatpush3.msra.mxu0 %v2027_v29 }
0x107e   :  { %2269 = vmatprep.subr.mxu0 %v2026_v30 }
0x107f   :  { %2270 = vmatpush3.msra.mxu0 %v2026_v30 }
0x1080   :  { %2271 = vmatprep.subr.mxu0 %v2025_v31 }
0x1081   :  { %2272 = vmatpush3.msra.mxu0 %v2025_v31 }
0x1082   :  { %2274 = vmatmul.mubr.msk.f32.vlgmr.msra.gmra.mxu0 %vm77_vm1, %v2713_v60  ;;  %2307 = vmatprep.subr.mxu0 %v2528_v0 }
0x1083   :  { %2276 = vmatprep.mubr.msk.f32.mxu0 %vm77_vm1, %v2743_v28  ;;  %2308 = vmatpush3.msra.mxu0 %v2842_v44 }
0x1084   :  { %2309 = vmatprep.subr.mxu0 %v2528_v0 }
0x1085   :  { %2310 = vmatpush3.msra.mxu0 %v2845_v45 }
0x1086   :  { %2277 = vmatmul.mubr.msk.f32.gmra.mxu0 %vm77_vm1, %v2765_v47  ;;  %2311 = vmatprep.subr.mxu0 %v2528_v0  ;;  %v2853_v47 = vld [vmem:[#allocation2 + $0x20] sm:$0xff] }
0x1087   :  { %2279 = vmatprep.mubr.msk.f32.mxu0 %vm77_vm1, %v707_v10  ;;  %2312 = vmatpush3.msra.mxu0 %v2849_v46 }
0x1088   :  { %2313 = vmatprep.subr.mxu0 %v2528_v0 }
0x1089   :  { %2314 = vmatpush3.msra.mxu0 %v2853_v47 }
0x108a   :  { %2280 = vmatmul.mubr.msk.f32.gmra.mxu0 %vm77_vm1, %v805_v27  ;;  %2329 = vmatprep.subr.mxu0 %v2528_v0 }
0x113a   :  { %v874_v32 = vpop.f32.mrf.mxu0 }
0x113b   :  { %v878_v33 = vadd.f32 %v874_v32, %v199_v36 }
0x113c   :  { %v2253_v34 = vpop.f32.mrf.mxu0 }
0x113d   :  { %v879_v60 = vmul.f32 %v878_v33, %v2656_v21 }
0x113f   :  { %2418 = vtanh.f32 %v879_v60 }
0x1142   :  { %v2275_v52 = vpop.f32.mrf.mxu0 }
0x1143   :  { %v1089_v31 = vadd.f32 %v2275_v52, %v2887_v57 }
0x1144   :  { %v1083_v56 = vpop.f32.mrf.mxu0 }
0x1145   :  { %v1084_v58 = vadd.f32 %v2887_v57, %v1083_v56 }
0x114c   :  { %v2419_v35 = vpop.eup %2418 }
0x114d   :  { %v881_v37 = vmul.f32 0.5, %v2419_v35 }
0x114f   :  { %v882_v38 = vadd.f32 0.5, %v881_v37 }
0x1151   :  { %v883_v28 = vsel %vm2644_vm4, %v2419_v35, %v882_v38 }
0x1152   :  { %886 = vrot.lane.b32.xlu0 %v883_v28, %s2531_s2  ;;  %v884_v41 = vmul.f32 %v883_v28, %v796_v22 }
0x11c4   :  { %v887_v39 = vpop.permute.xlu0 %886 }
0x11c5   :  { %v889_v40 = vmul.f32 %v887_v39, %v883_v28 }
0x11c7   :  { %891 = vrot.lane.b32.xlu1 %v889_v40, %s2532_s28 }
0x1239   :  { %v892_v5 = vpop.permute.xlu1 %891 }
0x123a   :  { %v2838_v42 = vadd.f32 %v892_v5, %v884_v41 }
0x123c   :  { %2420 = vtanh.f32 %v2838_v42 }
0x1249   :  { %v2421_v43 = vpop.eup %2420 }
0x124a   :  { %897 = vrot.lane.b32.xlu0 %v2421_v43, %s2531_s2 }
0x12bc   :  { %v898_v48 = vpop.permute.xlu0 %897 }
0x12bd   :  { %v900_v49 = vmul.f32 %v898_v48, %v883_v28 }
0x12bf   :  { %902 = vrot.lane.b32.xlu1 %v900_v49, %s2532_s28 }
0x1331   :  { %v903_v50 = vpop.permute.xlu1 %902 }
0x1332   :  { %2263 = vmatmul.mubr.msk.f32.vlgmr.msra.gmra.mxu1 %vm77_vm1, %v903_v50  ;;  %2282 = vmatprep.mubr.msk.f32.mxu0 %vm77_vm1, %v903_v50 }
0x1333   :  { %2286 = vmatpush3.msra.mxu1 %v2842_v44  ;;  %2293 = vmatprep.mubr.msk.f32.mxu1 %vm2529_vm0, %v2528_v0 }
0x1334   :  { %2287 = vmatprep.subr.mxu1 %v2528_v0 }
0x1335   :  { %2288 = vmatpush3.msra.mxu1 %v2845_v45 }
0x1336   :  { %2289 = vmatprep.subr.mxu1 %v2528_v0 }
0x1337   :  { %2290 = vmatpush3.msra.mxu1 %v2849_v46 }
0x1338   :  { %2291 = vmatprep.subr.mxu1 %v2528_v0 }
0x1339   :  { %2292 = vmatpush3.msra.mxu1 %v2853_v47 }
0x133a   :  { %2294 = vmatmul.mubr.f32.vlgmr.msra.gmra.mxu1 %v2528_v0  ;;  %2296 = vmatprep.subr.mxu1 %v2528_v0 }
0x133b   :  { %2297 = vmatpush3.msra.mxu1 %v2842_v44  ;;  %2304 = vmatprep.mubr.msk.f32.mxu1 %vm2529_vm0, %v2528_v0 }
0x133c   :  { %2298 = vmatprep.subr.mxu1 %v2528_v0 }
0x133d   :  { %2299 = vmatpush3.msra.mxu1 %v2845_v45 }
0x133e   :  { %2300 = vmatprep.subr.mxu1 %v2528_v0 }
0x133f   :  { %2301 = vmatpush3.msra.mxu1 %v2849_v46 }
0x1340   :  { %2302 = vmatprep.subr.mxu1 %v2528_v0 }
0x1341   :  { %2303 = vmatpush3.msra.mxu1 %v2853_v47 }
0x1342   :  { %2318 = vmatprep.subr.mxu1 %v2528_v0 }
0x13f2   :  { %v972_v53 = vpop.f32.mrf.mxu1 }
0x13f3   :  { %v976_v54 = vadd.f32 %v972_v53, %v204_v51  ;;  %v2278_v51 = vpop.f32.mrf.mxu0 }
0x13f4   :  { %v2264_v55 = vpop.f32.mrf.mxu1 }
0x13f5   :  { %v977_v11 = vmul.f32 %v976_v54, %v2656_v21  ;;  %v1093_v52 = vpop.f32.mrf.mxu0 }
0x13f7   :  { %v2938_v53 = vpop.f32.mrf.mxu0 }
0x13f9   :  { %v2940_v54 = vpop.f32.mrf.mxu0 }
0x13fa   :  { %v1193_v59 = vpop.f32.mrf.mxu1 }
0x13fb   :  { %v1197_v61 = vadd.f32 %v1193_v59, %v1084_v58  ;;  %v1094_v58 = vadd.f32 %v2887_v57, %v1093_v52 }
0x13fc   :  { %v2295_v62 = vpop.f32.mrf.mxu1 }
0x13fd   :  { %v1198_v1 = vmul.f32 %v1197_v61, %v2656_v21 }
0x13ff   :  { %2422 = vtanh.f32 %v1198_v1 }
0x1400   :  { %2424 = vtanh.f32 %v977_v11 }
0x140c   :  { %v2423_v6 = vpop.eup %2422 }
0x140d   :  { %v1200_v16 = vmul.f32 0.5, %v2423_v6  ;;  %v2425_v4 = vpop.eup %2424 }
0x140e   :  { %v979_v17 = vmul.f32 0.5, %v2425_v4 }
0x140f   :  { %v1201_v2 = vadd.f32 0.5, %v1200_v16 }
0x1410   :  { %v980_v7 = vadd.f32 0.5, %v979_v17 }
0x1411   :  { %v1202_v8 = vsel %vm2644_vm4, %v2423_v6, %v1201_v2 }
0x1412   :  { %1205 = vrot.lane.b32.xlu0 %v1202_v8, %s2531_s2  ;;  %v1203_v12 = vmul.f32 0.0, %v1202_v8  ;;  %v981_v9 = vsel %vm2644_vm4, %v2425_v4, %v980_v7  ;;  %v1099_v7 = vadd.f32 %v2278_v51, %v2887_v57 }
0x1413   :  { %v982_v24 = vmul.f32 %v981_v9, %v2838_v42 }
0x1484   :  { %v1206_v10 = vpop.permute.xlu0 %1205 }
0x1485   :  { %v1208_v3 = vmul.f32 %v1206_v10, %v1202_v8 }
0x1487   :  { %1210 = vrot.lane.b32.xlu1 %v1208_v3, %s2532_s28 }
0x14f9   :  { %v1211_v13 = vpop.permute.xlu1 %1210 }
0x14fa   :  { %v1213_v14 = vadd.f32 %v1211_v13, %v1203_v12 }
0x14fc   :  { %2426 = vtanh.f32 %v1213_v14 }
0x1509   :  { %v2427_v18 = vpop.eup %2426 }
0x150a   :  { %1216 = vrot.lane.b32.xlu0 %v2427_v18, %s2531_s2 }
0x150e   :  { %984 = vrot.lane.b32.xlu0 %v981_v9, %s2531_s2 }
0x157c   :  { %v1217_v19 = vpop.permute.xlu0 %1216 }
0x157d   :  { %v1219_v20 = vmul.f32 %v1217_v19, %v1202_v8 }
0x157f   :  { %1221 = vrot.lane.b32.xlu1 %v1219_v20, %s2532_s28 }
0x1580   :  { %v985_v63 = vpop.permute.xlu0 %984 }
0x1581   :  { %v987_v22 = vmul.f32 %v985_v63, %v981_v9 }
0x1583   :  { %989 = vrot.lane.b32.xlu0 %v987_v22, %s2532_s28 }
0x15f1   :  { %v1222_v23 = vpop.permute.xlu1 %1221 }
0x15f2   :  { %2305 = vmatmul.mubr.msk.f32.vlgmr.msra.gmra.mxu1 %vm77_vm1, %v1222_v23 }
0x15f3   :  { %2319 = vmatpush3.msra.mxu1 %v2842_v44  ;;  %2326 = vmatprep.mubr.msk.f32.mxu1 %vm2529_vm0, %v2528_v0 }
0x15f4   :  { %2320 = vmatprep.subr.mxu1 %v2528_v0 }
0x15f5   :  { %v990_v25 = vpop.permute.xlu0 %989  ;;  %2321 = vmatpush3.msra.mxu1 %v2845_v45 }
0x15f6   :  { %v992_v26 = vadd.f32 %v990_v25, %v982_v24  ;;  %2322 = vmatprep.subr.mxu1 %v2528_v0 }
0x15f7   :  { %2323 = vmatpush3.msra.mxu1 %v2849_v46 }
0x15f8   :  { %2428 = vtanh.f32 %v992_v26  ;;  %2324 = vmatprep.subr.mxu1 %v2528_v0 }
0x15f9   :  { %2325 = vmatpush3.msra.mxu1 %v2853_v47 }
0x15fa   :  { %2340 = vmatprep.subr.mxu1 %v2528_v0 }
0x1605   :  { %v2429_v27 = vpop.eup %2428 }
0x1606   :  { %995 = vrot.lane.b32.xlu0 %v2429_v27, %s2531_s2 }
0x1678   :  { %v996_v29 = vpop.permute.xlu0 %995 }
0x1679   :  { %v998_v30 = vmul.f32 %v996_v29, %v981_v9 }
0x167b   :  { %1013 = vrot.lane.b32.xlu0 %v998_v30, %s2532_s28 }
0x16b2   :  { %v1291_v36 = vpop.f32.mrf.mxu1 }
0x16b3   :  { %v1295_v32 = vadd.f32 %v1291_v36, %v1089_v31 }
0x16b4   :  { %v2306_v33 = vpop.f32.mrf.mxu1 }
0x16b5   :  { %v1296_v34 = vmul.f32 %v1295_v32, %v2656_v21 }
0x16b7   :  { %2430 = vtanh.f32 %v1296_v34 }
0x16c4   :  { %v2431_v60 = vpop.eup %2430 }
0x16c5   :  { %v1298_v35 = vmul.f32 0.5, %v2431_v60 }
0x16c7   :  { %v1299_v37 = vadd.f32 0.5, %v1298_v35 }
0x16c9   :  { %v1300_v38 = vsel %vm2644_vm4, %v2431_v60, %v1299_v37  ;;  %v1104_v60 = vadd.f32 %v2887_v57, %v2940_v54 }
0x16ca   :  { %1303 = vrot.lane.b32.xlu1 %v1300_v38, %s2531_s2  ;;  %v1301_v41 = vmul.f32 %v1300_v38, %v1213_v14 }
0x16ed   :  { %v1014_v28 = vpop.permute.xlu0 %1013 }
0x16ee   :  { %2283 = vmatmul.mubr.msk.f32.gmra.mxu0 %vm77_vm1, %v1014_v28 }
0x16ef   :  { %2315 = vmatprep.mubr.msk.f32.mxu0 %vm2529_vm0, %v2528_v0 }
0x173c   :  { %v1304_v39 = vpop.permute.xlu1 %1303 }
0x173d   :  { %v1306_v40 = vmul.f32 %v1304_v39, %v1300_v38 }
0x173f   :  { %1308 = vrot.lane.b32.xlu1 %v1306_v40, %s2532_s28 }
0x17ae   :  { %v2942_v55 = vpop.f32.mrf.mxu0 }
0x17b0   :  { %v2944_v56 = vpop.f32.mrf.mxu0 }
0x17b1   :  { %v1309_v5 = vpop.permute.xlu1 %1308 }
0x17b2   :  { %v1311_v42 = vadd.f32 %v1309_v5, %v1301_v41 }
0x17b4   :  { %2432 = vtanh.f32 %v1311_v42 }
0x17c1   :  { %v2433_v43 = vpop.eup %2432 }
0x17c2   :  { %1314 = vrot.lane.b32.xlu1 %v2433_v43, %s2531_s2 }
0x1834   :  { %v1315_v48 = vpop.permute.xlu1 %1314 }
0x1835   :  { %v1317_v49 = vmul.f32 %v1315_v48, %v1300_v38 }
0x1837   :  { %1319 = vrot.lane.b32.xlu1 %v1317_v49, %s2532_s28 }
0x18a9   :  { %v1320_v50 = vpop.permute.xlu1 %1319 }
0x18aa   :  { %2316 = vmatmul.mubr.msk.f32.vlgmr.msra.gmra.mxu0 %vm77_vm1, %v1320_v50 }
0x18ab   :  { %2330 = vmatpush3.msra.mxu0 %v2842_v44  ;;  %2337 = vmatprep.mubr.msk.f32.mxu0 %vm2529_vm0, %v2528_v0 }
0x18ac   :  { %2331 = vmatprep.subr.mxu0 %v2528_v0 }
0x18ad   :  { %2332 = vmatpush3.msra.mxu0 %v2845_v45 }
0x18ae   :  { %2333 = vmatprep.subr.mxu0 %v2528_v0 }
0x18af   :  { %2334 = vmatpush3.msra.mxu0 %v2849_v46 }
0x18b0   :  { %2335 = vmatprep.subr.mxu0 %v2528_v0 }
0x18b1   :  { %2336 = vmatpush3.msra.mxu0 %v2853_v47 }
0x18b2   :  { %2351 = vmatprep.subr.mxu0 %v2528_v0 }
0x196a   :  { %v1389_v59 = vpop.f32.mrf.mxu0 }
0x196b   :  { %v1393_v61 = vadd.f32 %v1389_v59, %v1094_v58  ;;  %v1109_v59 = vadd.f32 %v2938_v53, %v2887_v57 }
0x196c   :  { %v2317_v62 = vpop.f32.mrf.mxu0 }
0x196d   :  { %v1394_v1 = vmul.f32 %v1393_v61, %v2656_v21 }
0x196f   :  { %2434 = vtanh.f32 %v1394_v1 }
0x197c   :  { %v2435_v6 = vpop.eup %2434 }
0x197d   :  { %v1396_v16 = vmul.f32 0.5, %v2435_v6 }
0x197f   :  { %v1397_v2 = vadd.f32 0.5, %v1396_v16 }
0x1981   :  { %v1398_v8 = vsel %vm2644_vm4, %v2435_v6, %v1397_v2 }
0x1982   :  { %1401 = vrot.lane.b32.xlu0 %v1398_v8, %s2531_s2  ;;  %v1399_v11 = vmul.f32 %v1398_v8, %v1311_v42 }
0x19f4   :  { %v1402_v10 = vpop.permute.xlu0 %1401 }
0x19f5   :  { %v1404_v3 = vmul.f32 %v1402_v10, %v1398_v8 }
0x19f7   :  { %1406 = vrot.lane.b32.xlu1 %v1404_v3, %s2532_s28 }
0x1a69   :  { %v1407_v12 = vpop.permute.xlu1 %1406 }
0x1a6a   :  { %v1409_v13 = vadd.f32 %v1407_v12, %v1399_v11 }
0x1a6c   :  { %2436 = vtanh.f32 %v1409_v13 }
0x1a79   :  { %v2437_v14 = vpop.eup %2436 }
0x1a7a   :  { %1412 = vrot.lane.b32.xlu0 %v2437_v14, %s2531_s2  ;;  %v1114_v14 = vadd.f32 %v2887_v57, %v2944_v56 }
0x1aec   :  { %v1413_v4 = vpop.permute.xlu0 %1412 }
0x1aed   :  { %v1415_v17 = vmul.f32 %v1413_v4, %v1398_v8 }
0x1aef   :  { %1417 = vrot.lane.b32.xlu1 %v1415_v17, %s2532_s28 }
0x1b61   :  { %v1418_v18 = vpop.permute.xlu1 %1417 }
0x1b62   :  { %2327 = vmatmul.mubr.msk.f32.vlgmr.msra.gmra.mxu1 %vm77_vm1, %v1418_v18 }
0x1b63   :  { %2341 = vmatpush3.msra.mxu1 %v2842_v44  ;;  %2348 = vmatprep.mubr.msk.f32.mxu1 %vm2529_vm0, %v2528_v0 }
0x1b64   :  { %2342 = vmatprep.subr.mxu1 %v2528_v0 }
0x1b65   :  { %2343 = vmatpush3.msra.mxu1 %v2845_v45 }
0x1b66   :  { %2344 = vmatprep.subr.mxu1 %v2528_v0 }
0x1b67   :  { %2345 = vmatpush3.msra.mxu1 %v2849_v46 }
0x1b68   :  { %2346 = vmatprep.subr.mxu1 %v2528_v0 }
0x1b69   :  { %2347 = vmatpush3.msra.mxu1 %v2853_v47 }
0x1b6a   :  { %2362 = vmatprep.subr.mxu1 %v2528_v0 }
0x1c22   :  { %v1487_v9 = vpop.f32.mrf.mxu1 }
0x1c23   :  { %v1491_v19 = vadd.f32 %v1487_v9, %v1099_v7 }
0x1c24   :  { %v2328_v20 = vpop.f32.mrf.mxu1 }
0x1c25   :  { %v1492_v63 = vmul.f32 %v1491_v19, %v2656_v21 }
0x1c27   :  { %2438 = vtanh.f32 %v1492_v63 }
0x1c34   :  { %v2439_v22 = vpop.eup %2438 }
0x1c35   :  { %v1494_v23 = vmul.f32 0.5, %v2439_v22 }
0x1c37   :  { %v1495_v24 = vadd.f32 0.5, %v1494_v23 }
0x1c39   :  { %v1496_v25 = vsel %vm2644_vm4, %v2439_v22, %v1495_v24 }
0x1c3a   :  { %1499 = vrot.lane.b32.xlu0 %v1496_v25, %s2531_s2  ;;  %v1497_v29 = vmul.f32 %v1496_v25, %v1409_v13 }
0x1cac   :  { %v1500_v26 = vpop.permute.xlu0 %1499 }
0x1cad   :  { %v1502_v27 = vmul.f32 %v1500_v26, %v1496_v25 }
0x1caf   :  { %1504 = vrot.lane.b32.xlu1 %v1502_v27, %s2532_s28 }
0x1d21   :  { %v1505_v30 = vpop.permute.xlu1 %1504 }
0x1d22   :  { %v1507_v31 = vadd.f32 %v1505_v30, %v1497_v29 }
0x1d24   :  { %2440 = vtanh.f32 %v1507_v31 }
0x1d31   :  { %v2441_v36 = vpop.eup %2440 }
0x1d32   :  { %1510 = vrot.lane.b32.xlu0 %v2441_v36, %s2531_s2 }
0x1da4   :  { %v1511_v32 = vpop.permute.xlu0 %1510 }
0x1da5   :  { %v1513_v33 = vmul.f32 %v1511_v32, %v1496_v25 }
0x1da7   :  { %1515 = vrot.lane.b32.xlu1 %v1513_v33, %s2532_s28 }
0x1e19   :  { %v1516_v34 = vpop.permute.xlu1 %1515 }
0x1e1a   :  { %2338 = vmatmul.mubr.msk.f32.vlgmr.msra.gmra.mxu0 %vm77_vm1, %v1516_v34 }
0x1e1b   :  { %2352 = vmatpush3.msra.mxu0 %v2842_v44  ;;  %2359 = vmatprep.mubr.msk.f32.mxu0 %vm2529_vm0, %v2528_v0 }
0x1e1c   :  { %2353 = vmatprep.subr.mxu0 %v2528_v0 }
0x1e1d   :  { %2354 = vmatpush3.msra.mxu0 %v2845_v45 }
0x1e1e   :  { %2355 = vmatprep.subr.mxu0 %v2528_v0 }
0x1e1f   :  { %2356 = vmatpush3.msra.mxu0 %v2849_v46 }
0x1e20   :  { %2357 = vmatprep.subr.mxu0 %v2528_v0 }
0x1e21   :  { %2358 = vmatpush3.msra.mxu0 %v2853_v47 }
0x1e22   :  { %2373 = vmatprep.subr.mxu0 %v2528_v0 }
0x1eda   :  { %v1585_v35 = vpop.f32.mrf.mxu0 }
0x1edb   :  { %v1589_v37 = vadd.f32 %v1585_v35, %v1104_v60 }
0x1edc   :  { %v2339_v38 = vpop.f32.mrf.mxu0 }
0x1edd   :  { %v1590_v28 = vmul.f32 %v1589_v37, %v2656_v21 }
0x1edf   :  { %2442 = vtanh.f32 %v1590_v28 }
0x1eec   :  { %v2443_v39 = vpop.eup %2442 }
0x1eed   :  { %v1592_v40 = vmul.f32 0.5, %v2443_v39 }
0x1eef   :  { %v1593_v41 = vadd.f32 0.5, %v1592_v40 }
0x1ef1   :  { %v1594_v5 = vsel %vm2644_vm4, %v2443_v39, %v1593_v41  ;;  %v1909_v41 = vld [vmem:[#allocation5 + $0x18] sm:$0xff] }
0x1ef2   :  { %1597 = vrot.lane.b32.xlu0 %v1594_v5, %s2531_s2  ;;  %v1595_v48 = vmul.f32 %v1594_v5, %v1507_v31  ;;  %v1119_v31 = vadd.f32 %v2942_v55, %v2887_v57 }
0x1f64   :  { %v1598_v42 = vpop.permute.xlu0 %1597 }
0x1f65   :  { %v1600_v43 = vmul.f32 %v1598_v42, %v1594_v5 }
0x1f67   :  { %1602 = vrot.lane.b32.xlu1 %v1600_v43, %s2532_s28 }
0x1fd9   :  { %v1603_v49 = vpop.permute.xlu1 %1602 }
0x1fda   :  { %v1605_v50 = vadd.f32 %v1603_v49, %v1595_v48 }
0x1fdc   :  { %2444 = vtanh.f32 %v1605_v50 }
0x1fe9   :  { %v2445_v51 = vpop.eup %2444 }
0x1fea   :  { %1608 = vrot.lane.b32.xlu0 %v2445_v51, %s2531_s2 }
0x205c   :  { %v1609_v52 = vpop.permute.xlu0 %1608 }
0x205d   :  { %v1611_v54 = vmul.f32 %v1609_v52, %v1594_v5  ;;  %v1908_v5 = vld [vmem:[#allocation5 + $0x10] sm:$0xff] }
0x205f   :  { %1613 = vrot.lane.b32.xlu1 %v1611_v54, %s2532_s28 }
0x20d1   :  { %v1614_v58 = vpop.permute.xlu1 %1613 }
0x20d2   :  { %2349 = vmatmul.mubr.msk.f32.vlgmr.msra.gmra.mxu1 %vm77_vm1, %v1614_v58 }
0x20d3   :  { %2363 = vmatpush3.msra.mxu1 %v2842_v44  ;;  %2370 = vmatprep.mubr.msk.f32.mxu1 %vm2529_vm0, %v2528_v0 }
0x20d4   :  { %2364 = vmatprep.subr.mxu1 %v2528_v0 }
0x20d5   :  { %2365 = vmatpush3.msra.mxu1 %v2845_v45 }
0x20d6   :  { %2366 = vmatprep.subr.mxu1 %v2528_v0 }
0x20d7   :  { %2367 = vmatpush3.msra.mxu1 %v2849_v46 }
0x20d8   :  { %2368 = vmatprep.subr.mxu1 %v2528_v0 }
0x20d9   :  { %2369 = vmatpush3.msra.mxu1 %v2853_v47 }
0x2192   :  { %v1683_v61 = vpop.f32.mrf.mxu1 }
0x2193   :  { %v1687_v44 = vadd.f32 %v1683_v61, %v1109_v59 }
0x2194   :  { %v2350_v62 = vpop.f32.mrf.mxu1 }
0x2195   :  { %v1688_v1 = vmul.f32 %v1687_v44, %v2656_v21 }
0x2197   :  { %2446 = vtanh.f32 %v1688_v1 }
0x21a4   :  { %v2447_v6 = vpop.eup %2446 }
0x21a5   :  { %v1690_v16 = vmul.f32 0.5, %v2447_v6 }
0x21a7   :  { %v1691_v45 = vadd.f32 0.5, %v1690_v16 }
0x21a9   :  { %v1692_v2 = vsel %vm2644_vm4, %v2447_v6, %v1691_v45 }
0x21aa   :  { %1695 = vrot.lane.b32.xlu0 %v1692_v2, %s2531_s2  ;;  %v1693_v47 = vmul.f32 %v1692_v2, %v1605_v50  ;;  %v2046_v50 = vld [vmem:[%s3051_s7] ss:$0 sm:$0xff] }
0x221c   :  { %v1696_v46 = vpop.permute.xlu0 %1695 }
0x221d   :  { %v1698_v8 = vmul.f32 %v1696_v46, %v1692_v2 }
0x221f   :  { %1700 = vrot.lane.b32.xlu1 %v1698_v8, %s2532_s28 }
0x2291   :  { %v1701_v53 = vpop.permute.xlu1 %1700 }
0x2292   :  { %v1703_v10 = vadd.f32 %v1701_v53, %v1693_v47 }
0x2294   :  { %2448 = vtanh.f32 %v1703_v10 }
0x22a1   :  { %v2449_v3 = vpop.eup %2448 }
0x22a2   :  { %1706 = vrot.lane.b32.xlu0 %v2449_v3, %s2531_s2 }
0x2314   :  { %v1707_v11 = vpop.permute.xlu0 %1706 }
0x2315   :  { %v1709_v12 = vmul.f32 %v1707_v11, %v1692_v2 }
0x2317   :  { %1711 = vrot.lane.b32.xlu1 %v1709_v12, %s2532_s28 }
0x2389   :  { %v1712_v13 = vpop.permute.xlu1 %1711 }
0x238a   :  { %2360 = vmatmul.mubr.msk.f32.vlgmr.msra.gmra.mxu0 %vm77_vm1, %v1712_v13 }
0x238b   :  { %2381 = vmatprep.mubr.msk.f32.mxu0 %vm2529_vm0, %v2528_v0  ;;  %2374 = vmatpush3.msra.mxu0 %v1909_v41 }
0x238c   :  { %2375 = vmatprep.subr.mxu0 %v2528_v0 }
0x238d   :  { %2376 = vmatpush3.msra.mxu0 %v1908_v5 }
0x238e   :  { %2377 = vmatprep.subr.mxu0 %v2528_v0 }
0x244a   :  { %v1781_v4 = vpop.f32.mrf.mxu0 }
0x244b   :  { %v1785_v17 = vadd.f32 %v1781_v4, %v1114_v14 }
0x244c   :  { %v2361_v18 = vpop.f32.mrf.mxu0 }
0x244d   :  { %v1786_v7 = vmul.f32 %v1785_v17, %v2656_v21 }
0x244f   :  { %2450 = vtanh.f32 %v1786_v7 }
0x245c   :  { %v2451_v9 = vpop.eup %2450 }
0x245d   :  { %v1788_v19 = vmul.f32 0.5, %v2451_v9 }
0x245f   :  { %v1789_v20 = vadd.f32 0.5, %v1788_v19 }
0x2461   :  { %v1790_v63 = vsel %vm2644_vm4, %v2451_v9, %v1789_v20 }
0x2462   :  { %1793 = vrot.lane.b32.xlu0 %v1790_v63, %s2531_s2  ;;  %v1791_v24 = vmul.f32 %v1790_v63, %v1703_v10 }
0x24d4   :  { %v1794_v22 = vpop.permute.xlu0 %1793 }
0x24d5   :  { %v1796_v23 = vmul.f32 %v1794_v22, %v1790_v63 }
0x24d7   :  { %1798 = vrot.lane.b32.xlu1 %v1796_v23, %s2532_s28 }
0x2549   :  { %v1799_v56 = vpop.permute.xlu1 %1798 }
0x254a   :  { %v1801_v25 = vadd.f32 %v1799_v56, %v1791_v24 }
0x254c   :  { %2452 = vtanh.f32 %v1801_v25 }
0x2559   :  { %v2453_v26 = vpop.eup %2452 }
0x255a   :  { %1804 = vrot.lane.b32.xlu0 %v2453_v26, %s2531_s2 }
0x25cc   :  { %v1805_v27 = vpop.permute.xlu0 %1804 }
0x25cd   :  { %v1807_v29 = vmul.f32 %v1805_v27, %v1790_v63 }
0x25cf   :  { %1809 = vrot.lane.b32.xlu1 %v1807_v29, %s2532_s28 }
0x2641   :  { %v1810_v30 = vpop.permute.xlu1 %1809 }
0x2642   :  { %2371 = vmatmul.mubr.msk.f32.vlgmr.msra.gmra.mxu1 %vm77_vm1, %v1810_v30 }
0x2702   :  { %v1879_v36 = vpop.f32.mrf.mxu1 }
0x2703   :  { %v1883_v32 = vadd.f32 %v1879_v36, %v1119_v31 }
0x2704   :  { %v2372_v33 = vpop.f32.mrf.mxu1 }
0x2705   :  { %v1884_v34 = vmul.f32 %v1883_v32, %v2656_v21  ;;  %v1907_v21 = vld [vmem:[#allocation5 + $0x8] sm:$0xff] }
0x2706   :  { %2378 = vmatpush3.msra.mxu0 %v1907_v21 }
0x2707   :  { %2454 = vtanh.f32 %v1884_v34  ;;  %2379 = vmatprep.subr.mxu0 %v2528_v0 }
0x2708   :  { %2380 = vmatpush3.msra.mxu0 %v1906_v15 }
0x2714   :  { %v2455_v60 = vpop.eup %2454 }
0x2715   :  { %v1886_v35 = vmul.f32 0.5, %v2455_v60 }
0x2717   :  { %v1887_v37 = vadd.f32 0.5, %v1886_v35 }
0x2719   :  { %v1888_v38 = vsel %vm2644_vm4, %v2455_v60, %v1887_v37 }
0x271a   :  { %1891 = vrot.lane.b32.xlu0 %v1888_v38, %s2531_s2  ;;  %v1889_v40 = vmul.f32 %v1888_v38, %v1801_v25 }
0x278c   :  { %v1892_v28 = vpop.permute.xlu0 %1891 }
0x278d   :  { %v1894_v39 = vmul.f32 %v1892_v28, %v1888_v38 }
0x278f   :  { %1896 = vrot.lane.b32.xlu1 %v1894_v39, %s2532_s28 }
0x2801   :  { %v1897_v57 = vpop.permute.xlu1 %1896 }
0x2802   :  { %v1899_v55 = vadd.f32 %v1897_v57, %v1889_v40 }
0x2804   :  { %2456 = vtanh.f32 %v1899_v55 }
0x2811   :  { %v2457_v42 = vpop.eup %2456 }
0x2812   :  { %1902 = vrot.lane.b32.xlu0 %v2457_v42, %s2531_s2 }
0x2884   :  { %v1903_v43 = vpop.permute.xlu0 %1902 }
0x2885   :  { %v1905_v48 = vmul.f32 %v1903_v43, %v1888_v38 }
0x2887   :  { %1918 = vrot.lane.b32.xlu1 %v1905_v48, %s2532_s28 }
0x28f9   :  { %v1919_v49 = vpop.permute.xlu1 %1918 }
0x28fa   :  { %2382 = vmatmul.mubr.msk.f32.vlgmr.msra.gmra.mxu0 %vm77_vm1, %v1919_v49 }
0x29ba   :  { %v1988_v51 = vpop.f32.mrf.mxu0 }
0x29bb   :  { %v1989_v52 = vadd.f32 %v2046_v50, %v1988_v51 }
0x29bc   :  { %v2383_v0 = vpop.f32.mrf.mxu0 }
0x29bd   :  { %1992 = vst [vmem:[#allocation7] sm:$0xff] %v1989_v52 }
0x29be   :  { %2509 = shalt.err (!%p2506_p0)
}
0x29bf   :  { %2002 = dma.vmem_to_hbm [thread:$0]  %s2000_s1, 128, %s3052_s8, [#allocation4]  }
0x29c0   :  { %2522 = dma.done.wait [#allocation4], 128  }
0x29c1   :  { %2523 = vsyncadd [#allocation4], 4294967168 }
0x29c2   :  { %2006 = vsyncpa [#allocation3], 1 }
0x29c3   :  { %2007 = vsyncpa [#allocation6], 1 }
0x29c4   :  { %2008 = vsyncpa [#allocation4], 1 }

</bundles_post_ra>
